<compile_context>
chip_gen: v7x
topology: tpu7x:2x2x1
jax: 0.10.0
libtpu: 0.0.40
codegen_flags: <defaults>
</compile_context>

<pallas_src>
import jax
import jax.numpy as jnp
from jax import lax
from jax.experimental import pallas as pl
from jax.experimental.pallas import tpu as pltpu

REAL_MIN = 1e-10   # torch real_min
REAL_MAX = 10.0    # torch real_max
REPEATS = 256      # repmat(): x.repeat(1, 256)


# -----------------------------------------------------------------------------
# Fused forward kernel: h_mlp -> {scale_net, shape_net(+repmat)} -> reparameterize
# -----------------------------------------------------------------------------
def _encoder_fwd_kernel(flat_ref, w1_ref, b1_ref, ws_ref, bs_ref, wk_ref, bk_ref,
                        eps_ref, theta_ref, shape_ref, scale_ref):
    flat = flat_ref[...]                                           # [TB, F] (hoisted once)

    # h = ReLU(flat @ W1 + b1)  -- MXU matmul, f32 accumulate
    h = jnp.dot(flat, w1_ref[...], preferred_element_type=jnp.float32) + b1_ref[...]
    h = jnp.maximum(h, 0.0)                                        # [TB, H]

    # scale1 = max(log(1 + exp(h @ Ws + bs)), real_min)
    s_lin = jnp.dot(h, ws_ref[...], preferred_element_type=jnp.float32) + bs_ref[...]
    scale1 = jnp.maximum(jnp.log(1.0 + jnp.exp(s_lin)), REAL_MIN)  # [TB, K]

    # shape_net: Linear(H, 1) expressed as a lane reduction, then the repmat
    # (repeat(1, 256)) as ONE lane-dense broadcast -- this is the collapsed,
    # widened version of the old 256-step repmat kernel (single unmasked
    # [TB, 256] store instead of 256 tiny strided writes).
    k_lin = jnp.sum(h * wk_ref[...], axis=-1, keepdims=True) + bk_ref[...]   # [TB, 1]
    k_rep = jnp.broadcast_to(k_lin, scale1.shape)                            # [TB, K]
    shape1 = jnp.minimum(jnp.maximum(jnp.log(1.0 + jnp.exp(k_rep)), REAL_MIN), REAL_MAX)

    # reparameterize: theta = scale * (-log(max(1 - eps, real_min))) ** (1 / shape)
    base = -jnp.log(jnp.maximum(1.0 - eps_ref[...], REAL_MIN))     # > 0 always (eps <= 0.9)
    theta = scale1 * jnp.exp(jnp.log(base) / shape1)

    theta_ref[...] = theta
    shape_ref[...] = shape1
    scale_ref[...] = scale1


def mlp_encoder_img_forward(flat, w1, b1, ws, bs, wk_row, bk, eps, *, block_b=None):
    """Fused Pallas forward of MLP_ENCODER_IMG. Returns (theta1, shape1, scale1)."""
    B, F = flat.shape
    H = w1.shape[1]
    K = eps.shape[1]
    assert w1.shape == (F, H) and b1.shape == (1, H)
    assert ws.shape == (H, H) and bs.shape == (1, H)
    assert wk_row.shape == (1, H) and bk.shape == (1, 1)
    assert K == H == REPEATS, "module fixes hidden / Theta1 dims at 256"

    if block_b is None:
        block_b = B if B <= 256 else 256        # whole batch per step for small B
    assert B % block_b == 0, "batch must be a multiple of the batch tile"
    grid = (B // block_b,)

    out_shape = (
        jax.ShapeDtypeStruct((B, K), jnp.float32),  # theta1
        jax.ShapeDtypeStruct((B, K), jnp.float32),  # shape1
        jax.ShapeDtypeStruct((B, K), jnp.float32),  # scale1
    )

    cost = pl.CostEstimate(
        flops=2 * B * F * H + 2 * B * H * H + 12 * B * K,
        transcendentals=6 * B * K,
        bytes_accessed=4 * (B * F + F * H + H * H + 3 * H + 1 + 4 * B * K),
    )

    return pl.pallas_call(
        _encoder_fwd_kernel,
        out_shape=out_shape,
        grid_spec=pltpu.PrefetchScalarGridSpec(
            num_scalar_prefetch=0,
            grid=grid,
            in_specs=[
                pl.BlockSpec((block_b, F), lambda i: (i, 0)),   # flat (batch-tiled)
                pl.BlockSpec((F, H), lambda i: (0, 0)),         # W1   (resident)
                pl.BlockSpec((1, H), lambda i: (0, 0)),         # b1
                pl.BlockSpec((H, H), lambda i: (0, 0)),         # Ws
                pl.BlockSpec((1, H), lambda i: (0, 0)),         # bs
                pl.BlockSpec((1, H), lambda i: (0, 0)),         # Wk (stored as a row)
                pl.BlockSpec((1, 1), lambda i: (0, 0)),         # bk
                pl.BlockSpec((block_b, K), lambda i: (i, 0)),   # eps
            ],
            out_specs=[
                pl.BlockSpec((block_b, K), lambda i: (i, 0)),   # theta1
                pl.BlockSpec((block_b, K), lambda i: (i, 0)),   # shape1
                pl.BlockSpec((block_b, K), lambda i: (i, 0)),   # scale1
            ],
        ),
        compiler_params=pltpu.CompilerParams(
            dimension_semantics=("parallel",),       # independent batch tiles (v7x: 2 TCs)
            vmem_limit_bytes=32 * 1024 * 1024,       # explicit; safe for v7x's smaller VMEM
        ),
        cost_estimate=cost,
    )(flat, w1, b1, ws, bs, wk_row, bk, eps)


# -----------------------------------------------------------------------------
# Standalone optimized repmat (x.repeat(1, 256)) -- grid collapsed, wide slabs
# -----------------------------------------------------------------------------
def _repmat_kernel(x_ref, o_ref):
    x = x_ref[...]                                  # load once, reuse for all copies
    D = x.shape[-1]
    reps = o_ref.shape[-1] // D                     # copies written this grid step
    for r in range(reps):                           # static unroll; VMEM stores only —
        o_ref[:, r * D:(r + 1) * D] = x             # HBM writeback is one wide lane-dense slab


def _pick_copies_per_step(B, D, repeats, itemsize, slab_budget_bytes):
    # Largest divisor R of `repeats` whose (B, D*R) output slab fits the VMEM
    # budget and is lane-dense ((D*R) % 128 == 0) or the full output width.
    candidates = [r for r in range(1, repeats + 1)
                  if repeats % r == 0 and ((D * r) % 128 == 0 or r == repeats)]
    in_budget = [r for r in candidates if B * D * r * itemsize <= slab_budget_bytes]
    return max(in_budget) if in_budget else min(candidates)


def repmat(x, repeats: int = REPEATS):
    """Equivalent of torch `x.repeat(1, repeats)` for a 2-D input [B, D]."""
    assert x.ndim == 2, "repmat kernel expects a 2-D input [B, D]"
    B, D = x.shape
    itemsize = jnp.dtype(x.dtype).itemsize
    # 8 MiB slab budget: 2 output buffers + resident input stay well inside the
    # 32 MiB scoped-VMEM limit (v7x: 64 MiB physical; v5e/v6e: 128 MiB).
    R = _pick_copies_per_step(B, D, repeats, itemsize, slab_budget_bytes=8 * 1024 * 1024)
    grid = (repeats // R,)   # e.g. B=2, D=128, f32 -> R=256, grid=(1,)

    cost = pl.CostEstimate(flops=0, transcendentals=0,
                           bytes_accessed=B * D * itemsize * (1 + repeats))

    return pl.pallas_call(
        _repmat_kernel,
        out_shape=jax.ShapeDtypeStruct((B, D * repeats), x.dtype),
        grid_spec=pltpu.PrefetchScalarGridSpec(
            num_scalar_prefetch=0,
            grid=grid,
            in_specs=[pl.BlockSpec((B, D), lambda g: (0, 0))],      # resident input
            out_specs=pl.BlockSpec((B, D * R), lambda g: (0, g)),   # wide slab per step
        ),
        compiler_params=pltpu.CompilerParams(
            dimension_semantics=("parallel",),
            vmem_limit_bytes=32 * 1024 * 1024,
        ),
        cost_estimate=cost,
    )(x)


# -----------------------------------------------------------------------------
# Pure-JAX reference (mirrors the torch forward) for correctness checks
# -----------------------------------------------------------------------------
def _forward_reference(flat, w1, b1, ws, bs, wk_row, bk, eps):
    hp = lax.Precision.HIGHEST
    h = jnp.maximum(jnp.dot(flat, w1, precision=hp) + b1, 0.0)
    scale1 = jnp.maximum(jnp.log(1.0 + jnp.exp(jnp.dot(h, ws, precision=hp) + bs)), REAL_MIN)
    k_lin = jnp.dot(h, wk_row.T, precision=hp) + bk                 # Linear(256, 1)
    k_rep = jnp.tile(k_lin, (1, eps.shape[1]))                      # repmat -> [B, 256]
    shape1 = jnp.minimum(jnp.maximum(jnp.log(1.0 + jnp.exp(k_rep)), REAL_MIN), REAL_MAX)
    theta1 = scale1 * jnp.power(-jnp.log(jnp.maximum(1.0 - eps, REAL_MIN)), 1.0 / shape1)
    return theta1, shape1, scale1


if __name__ == "__main__":
    key = jax.random.PRNGKey(0)
    k_flat, k_w1, k_b1, k_ws, k_bs, k_wk, k_bk, k_eps, k_x = jax.random.split(key, 9)

    B, F_IN, H = 2, 2048, 256   # small batch; Linear(2048,256); Theta1_DIM = repmat count = 256

    flat = jax.random.normal(k_flat, (B, F_IN), dtype=jnp.float32)
    w1 = 0.02 * jax.random.normal(k_w1, (F_IN, H), dtype=jnp.float32)
    b1 = 0.02 * jax.random.normal(k_b1, (1, H), dtype=jnp.float32)
    ws = 0.05 * jax.random.normal(k_ws, (H, H), dtype=jnp.float32)
    bs = 0.05 * jax.random.normal(k_bs, (1, H), dtype=jnp.float32)
    wk = 0.05 * jax.random.normal(k_wk, (1, H), dtype=jnp.float32)   # Linear(256,1).weight as a row
    bk = 0.05 * jax.random.normal(k_bk, (1, 1), dtype=jnp.float32)
    # torch draws eps ~ uniform(0.1, 0.9) on-device; supplied here as an input.
    eps = jax.random.uniform(k_eps, (B, H), dtype=jnp.float32, minval=0.1, maxval=0.9)

    theta1, shape1, scale1 = mlp_encoder_img_forward(flat, w1, b1, ws, bs, wk, bk, eps)
    theta1, shape1, scale1 = jax.block_until_ready((theta1, shape1, scale1))

    theta_r, shape_r, scale_r = _forward_reference(flat, w1, b1, ws, bs, wk, bk, eps)
    assert theta1.shape == (B, H) and shape1.shape == (B, H) and scale1.shape == (B, H)
    assert bool(jnp.allclose(scale1, scale_r, rtol=5e-3, atol=1e-4)), "scale1 mismatch"
    assert bool(jnp.allclose(shape1, shape_r, rtol=5e-3, atol=1e-4)), "shape1 mismatch"
    assert bool(jnp.allclose(theta1, theta_r, rtol=5e-3, atol=1e-4)), "theta1 mismatch"

    # Standalone optimized repmat check (grid collapsed to a single wide slab here).
    x_small = jax.random.normal(k_x, (B, 128), dtype=jnp.float32)
    rep = jax.block_until_ready(repmat(x_small))
    assert rep.shape == (B, 128 * REPEATS)
    assert bool(jnp.array_equal(rep, jnp.tile(x_small, (1, REPEATS)))), "repmat mismatch"

    print("KERNEL_OK")
</pallas_src>

<mosaic_0001>
module attributes {stable_mosaic.version = 11 : i64} {
  func.func @_encoder_fwd_kernel(%arg0: i32, %arg1: memref<2x2048xf32, #tpu.memory_space<vmem>>, %arg2: memref<2048x256xf32, #tpu.memory_space<vmem>>, %arg3: memref<1x256xf32, #tpu.memory_space<vmem>>, %arg4: memref<256x256xf32, #tpu.memory_space<vmem>>, %arg5: memref<1x256xf32, #tpu.memory_space<vmem>>, %arg6: memref<1x256xf32, #tpu.memory_space<vmem>>, %arg7: memref<1x1xf32, #tpu.memory_space<vmem>>, %arg8: memref<2x256xf32, #tpu.memory_space<vmem>>, %arg9: memref<2x256xf32, #tpu.memory_space<vmem>>, %arg10: memref<2x256xf32, #tpu.memory_space<vmem>>, %arg11: memref<2x256xf32, #tpu.memory_space<vmem>>) attributes {dimension_semantics = [#tpu.dimension_semantics<parallel>], iteration_bounds = array<i64: 1>, scalar_prefetch = 0 : i64, scratch_operands = 0 : i64, tpu.core_type = #tpu.core_type<tc>, window_params = [{transform_indices = @transform_0, window_bounds = array<i64: 2, 2048>}, {pipeline_mode = #tpu.pipeline_mode<synchronous>, transform_indices = @transform_1, window_bounds = array<i64: 2048, 256>}, {pipeline_mode = #tpu.pipeline_mode<synchronous>, transform_indices = @transform_2, window_bounds = array<i64: 1, 256>}, {pipeline_mode = #tpu.pipeline_mode<synchronous>, transform_indices = @transform_3, window_bounds = array<i64: 256, 256>}, {pipeline_mode = #tpu.pipeline_mode<synchronous>, transform_indices = @transform_4, window_bounds = array<i64: 1, 256>}, {pipeline_mode = #tpu.pipeline_mode<synchronous>, transform_indices = @transform_5, window_bounds = array<i64: 1, 256>}, {pipeline_mode = #tpu.pipeline_mode<synchronous>, transform_indices = @transform_6, window_bounds = array<i64: 1, 1>}, {transform_indices = @transform_7, window_bounds = array<i64: 2, 256>}, {transform_indices = @transform_8, window_bounds = array<i64: 2, 256>}, {transform_indices = @transform_9, window_bounds = array<i64: 2, 256>}, {transform_indices = @transform_10, window_bounds = array<i64: 2, 256>}]} {
    %c0 = arith.constant 0 : index
    %c0_0 = arith.constant 0 : index
    %0 = vector.load %arg1[%c0, %c0_0] : memref<2x2048xf32, #tpu.memory_space<vmem>>, vector<2x2048xf32>
    %c0_1 = arith.constant 0 : index
    %c0_2 = arith.constant 0 : index
    %1 = vector.load %arg2[%c0_1, %c0_2] : memref<2048x256xf32, #tpu.memory_space<vmem>>, vector<2048x256xf32>
    %cst = arith.constant dense<0.000000e+00> : vector<2x256xf32>
    %2 = tpu.matmul %0, %1, %cst {dimension_numbers = #tpu.dot_dimension_numbers<[1], [0], [0], [1], [0, 0, 1, 1], [], []>} : vector<2x2048xf32>, vector<2048x256xf32>, vector<2x256xf32> -> vector<2x256xf32>
    %c0_3 = arith.constant 0 : index
    %c0_4 = arith.constant 0 : index
    %3 = vector.load %arg3[%c0_3, %c0_4] : memref<1x256xf32, #tpu.memory_space<vmem>>, vector<1x256xf32>
    %4 = vector.broadcast %3 : vector<1x256xf32> to vector<2x256xf32>
    %5 = arith.addf %2, %4 : vector<2x256xf32>
    %cst_5 = arith.constant 0.000000e+00 : f32
    %6 = vector.broadcast %cst_5 : f32 to vector<2x256xf32>
    %7 = arith.maximumf %5, %6 : vector<2x256xf32>
    %c0_6 = arith.constant 0 : index
    %c0_7 = arith.constant 0 : index
    %8 = vector.load %arg4[%c0_6, %c0_7] : memref<256x256xf32, #tpu.memory_space<vmem>>, vector<256x256xf32>
    %cst_8 = arith.constant dense<0.000000e+00> : vector<2x256xf32>
    %9 = tpu.matmul %7, %8, %cst_8 {dimension_numbers = #tpu.dot_dimension_numbers<[1], [0], [0], [1], [0, 0, 1, 1], [], []>} : vector<2x256xf32>, vector<256x256xf32>, vector<2x256xf32> -> vector<2x256xf32>
    %c0_9 = arith.constant 0 : index
    %c0_10 = arith.constant 0 : index
    %10 = vector.load %arg5[%c0_9, %c0_10] : memref<1x256xf32, #tpu.memory_space<vmem>>, vector<1x256xf32>
    %11 = vector.broadcast %10 : vector<1x256xf32> to vector<2x256xf32>
    %12 = arith.addf %9, %11 : vector<2x256xf32>
    %13 = math.exp %12 : vector<2x256xf32>
    %cst_11 = arith.constant 1.000000e+00 : f32
    %14 = vector.broadcast %cst_11 : f32 to vector<2x256xf32>
    %15 = arith.addf %14, %13 : vector<2x256xf32>
    %16 = math.log %15 : vector<2x256xf32>
    %cst_12 = arith.constant 1.000000e-10 : f32
    %17 = vector.broadcast %cst_12 : f32 to vector<2x256xf32>
    %18 = arith.maximumf %16, %17 : vector<2x256xf32>
    %c0_13 = arith.constant 0 : index
    %c0_14 = arith.constant 0 : index
    %19 = vector.load %arg6[%c0_13, %c0_14] : memref<1x256xf32, #tpu.memory_space<vmem>>, vector<1x256xf32>
    %20 = vector.broadcast %19 : vector<1x256xf32> to vector<2x256xf32>
    %21 = arith.mulf %7, %20 : vector<2x256xf32>
    %cst_15 = arith.constant dense<0.000000e+00> : vector<2xf32>
    %22 = vector.multi_reduction <add>, %21, %cst_15 [1] : vector<2x256xf32> to vector<2xf32>
    %23 = vector.shape_cast %22 : vector<2xf32> to vector<2x1xf32>
    %c0_16 = arith.constant 0 : index
    %c0_17 = arith.constant 0 : index
    %24 = vector.load %arg7[%c0_16, %c0_17] : memref<1x1xf32, #tpu.memory_space<vmem>>, vector<1x1xf32>
    %25 = vector.broadcast %24 : vector<1x1xf32> to vector<2x1xf32>
    %26 = arith.addf %23, %25 : vector<2x1xf32>
    %27 = vector.shape_cast %26 : vector<2x1xf32> to vector<2x1xf32>
    %28 = vector.broadcast %27 : vector<2x1xf32> to vector<2x256xf32>
    %29 = math.exp %28 : vector<2x256xf32>
    %cst_18 = arith.constant 1.000000e+00 : f32
    %30 = vector.broadcast %cst_18 : f32 to vector<2x256xf32>
    %31 = arith.addf %30, %29 : vector<2x256xf32>
    %32 = math.log %31 : vector<2x256xf32>
    %cst_19 = arith.constant 1.000000e-10 : f32
    %33 = vector.broadcast %cst_19 : f32 to vector<2x256xf32>
    %34 = arith.maximumf %32, %33 : vector<2x256xf32>
    %cst_20 = arith.constant 1.000000e+01 : f32
    %35 = vector.broadcast %cst_20 : f32 to vector<2x256xf32>
    %36 = arith.minimumf %34, %35 : vector<2x256xf32>
    %c0_21 = arith.constant 0 : index
    %c0_22 = arith.constant 0 : index
    %37 = vector.load %arg8[%c0_21, %c0_22] : memref<2x256xf32, #tpu.memory_space<vmem>>, vector<2x256xf32>
    %cst_23 = arith.constant 1.000000e+00 : f32
    %38 = vector.broadcast %cst_23 : f32 to vector<2x256xf32>
    %39 = arith.subf %38, %37 : vector<2x256xf32>
    %cst_24 = arith.constant 1.000000e-10 : f32
    %40 = vector.broadcast %cst_24 : f32 to vector<2x256xf32>
    %41 = arith.maximumf %39, %40 : vector<2x256xf32>
    %42 = math.log %41 : vector<2x256xf32>
    %cst_25 = arith.constant 0.000000e+00 : f32
    %43 = vector.broadcast %cst_25 : f32 to vector<2x256xf32>
    %44 = arith.subf %43, %42 : vector<2x256xf32>
    %45 = math.log %44 : vector<2x256xf32>
    %46 = arith.divf %45, %36 : vector<2x256xf32>
    %47 = math.exp %46 : vector<2x256xf32>
    %48 = arith.mulf %18, %47 : vector<2x256xf32>
    %c0_26 = arith.constant 0 : index
    %c0_27 = arith.constant 0 : index
    %49 = vector.load %arg9[%c0_26, %c0_27] : memref<2x256xf32, #tpu.memory_space<vmem>>, vector<2x256xf32>
    tpu.vector_store %arg9[%c0_26, %c0_27], %48 {strides = array<i32>} : memref<2x256xf32, #tpu.memory_space<vmem>>, vector<2x256xf32>,
    %c0_28 = arith.constant 0 : index
    %c0_29 = arith.constant 0 : index
    %50 = vector.load %arg10[%c0_28, %c0_29] : memref<2x256xf32, #tpu.memory_space<vmem>>, vector<2x256xf32>
    tpu.vector_store %arg10[%c0_28, %c0_29], %36 {strides = array<i32>} : memref<2x256xf32, #tpu.memory_space<vmem>>, vector<2x256xf32>,
    %c0_30 = arith.constant 0 : index
    %c0_31 = arith.constant 0 : index
    %51 = vector.load %arg11[%c0_30, %c0_31] : memref<2x256xf32, #tpu.memory_space<vmem>>, vector<2x256xf32>
    tpu.vector_store %arg11[%c0_30, %c0_31], %18 {strides = array<i32>} : memref<2x256xf32, #tpu.memory_space<vmem>>, vector<2x256xf32>,
    return
  }
  func.func @transform_0(%arg0: i32) -> (i32, i32) {
    %c0_i32 = arith.constant 0 : i32
    %c0_i32_0 = arith.constant 0 : i32
    return %arg0, %c0_i32 : i32, i32
  }
  func.func @transform_1(%arg0: i32) -> (i32, i32) {
    %c0_i32 = arith.constant 0 : i32
    %c0_i32_0 = arith.constant 0 : i32
    %c0_i32_1 = arith.constant 0 : i32
    return %c0_i32, %c0_i32_0 : i32, i32
  }
  func.func @transform_2(%arg0: i32) -> (i32, i32) {
    %c0_i32 = arith.constant 0 : i32
    %c0_i32_0 = arith.constant 0 : i32
    %c0_i32_1 = arith.constant 0 : i32
    return %c0_i32, %c0_i32_0 : i32, i32
  }
  func.func @transform_3(%arg0: i32) -> (i32, i32) {
    %c0_i32 = arith.constant 0 : i32
    %c0_i32_0 = arith.constant 0 : i32
    %c0_i32_1 = arith.constant 0 : i32
    return %c0_i32, %c0_i32_0 : i32, i32
  }
  func.func @transform_4(%arg0: i32) -> (i32, i32) {
    %c0_i32 = arith.constant 0 : i32
    %c0_i32_0 = arith.constant 0 : i32
    %c0_i32_1 = arith.constant 0 : i32
    return %c0_i32, %c0_i32_0 : i32, i32
  }
  func.func @transform_5(%arg0: i32) -> (i32, i32) {
    %c0_i32 = arith.constant 0 : i32
    %c0_i32_0 = arith.constant 0 : i32
    %c0_i32_1 = arith.constant 0 : i32
    return %c0_i32, %c0_i32_0 : i32, i32
  }
  func.func @transform_6(%arg0: i32) -> (i32, i32) {
    %c0_i32 = arith.constant 0 : i32
    %c0_i32_0 = arith.constant 0 : i32
    %c0_i32_1 = arith.constant 0 : i32
    return %c0_i32, %c0_i32_0 : i32, i32
  }
  func.func @transform_7(%arg0: i32) -> (i32, i32) {
    %c0_i32 = arith.constant 0 : i32
    %c0_i32_0 = arith.constant 0 : i32
    return %arg0, %c0_i32 : i32, i32
  }
  func.func @transform_8(%arg0: i32) -> (i32, i32) {
    %c0_i32 = arith.constant 0 : i32
    %c0_i32_0 = arith.constant 0 : i32
    return %arg0, %c0_i32 : i32, i32
  }
  func.func @transform_9(%arg0: i32) -> (i32, i32) {
    %c0_i32 = arith.constant 0 : i32
    %c0_i32_0 = arith.constant 0 : i32
    return %arg0, %c0_i32 : i32, i32
  }
  func.func @transform_10(%arg0: i32) -> (i32, i32) {
    %c0_i32 = arith.constant 0 : i32
    %c0_i32_0 = arith.constant 0 : i32
    return %arg0, %c0_i32 : i32, i32
  }
}

</mosaic_0001>

<bundles_post_ra>
// kernel: tpu_custom_call.1
= control target key start
LH: loop header
LB: loop body
LE: loop exit
PB: predicated region body
PF: predicated region fallthrough
CT: control target
= control target key end

     0   :  { %s2761_s0 = inlined_call_operand.hbm [shape: f32[2,2048], index: 0, kind: input, shape index: {}]   ;;  %s2762_s1 = inlined_call_operand.hbm [shape: f32[2048,256], index: 1, kind: input, shape index: {}]   ;;  %s2763_s2 = inlined_call_operand.hbm [shape: f32[1,256], index: 2, kind: input, shape index: {}]   ;;  %s2764_s3 = inlined_call_operand.hbm [shape: f32[256,256], index: 3, kind: input, shape index: {}]   ;;  %s2765_s4 = inlined_call_operand.hbm [shape: f32[1,256], index: 4, kind: input, shape index: {}]   ;;  %s2766_s5 = inlined_call_operand.hbm [shape: f32[1,256], index: 5, kind: input, shape index: {}]   ;;  %s2767_s6 = inlined_call_operand.<no memory space> [shape: f32[1,1], index: 6, kind: input, shape index: {}]   ;;  %s2768_s7 = inlined_call_operand.hbm [shape: f32[2,256], index: 7, kind: input, shape index: {}]   ;;  %s2769_s8 = inlined_call_operand.hbm [shape: f32[2,256], index: 8, kind: output, shape index: {0}]   ;;  %s2770_s9 = inlined_call_operand.hbm [shape: f32[2,256], index: 9, kind: output, shape index: {1}]   ;;  %s2771_s10 = inlined_call_operand.hbm [shape: f32[2,256], index: 10, kind: output, shape index: {2}]  }
   0x1   :  { %v16_v0 = vstv %s2767_s6 }
   0x2   :  { %17 = vst [vmem:[#allocation2] sm:$0x1] %v16_v0 }
   0x3   :  { %18 = vsyncpa [#allocation4], 0 }
   0x4   :  { %19 = vsyncpa [#allocation7], 0 }
   0x5   :  { %20 = vsyncpa [#allocation10], 0 }
   0x6   :  { %21 = vsyncpa [#allocation13], 0 }
   0x7   :  { %22 = vsyncpa [#allocation5], 0 }
   0x8   :  { %23 = vsyncpa [#allocation17], 0  ;;  %s2477_s15 = smov [#allocation6]   ;;  %s2245_s19 = scalar_lea.hbm %s2762_s1, 65536 }
   0x9   :  { %s39_s16 = sshll.u32 %s2477_s15, 4  ;;  %p2246_p0 = scmp.ne.s32.totalorder %s2762_s1, %s2245_s19  ;;  %s40_s16 = int_to_ptr.vmem [resolvable:$true] %s39_s16 }
   0xa   :  { %p2249_p1 = scmp.lt.u32.totalorder %s2245_s19, %s2762_s1 }
   0xc   :  { %p2251_p2 = pnand %p2249_p1, %p2246_p0 }
   0xe   :  { %2254 = shalt.err (!%p2251_p2)
}
   0xf   :  { %s2255_s23 = scalar_lea.vmem %s40_s16, 65536  ;;  %p2260_p4 = scmp.lt.s32.totalorder %s40_s16, %s40_s16 }
  0x10   :  { %p2256_p3 = scmp.ne.s32.totalorder %s40_s16, %s2255_s23  ;;  %p2261_p5 = scmp.lt.s32.totalorder %s2255_s23, %s2255_s23 }
  0x12   :  { %p2262_p6 = por %p2261_p5, %p2260_p4 }
  0x14   :  { %p2263_p7 = pnand %p2262_p6, %p2256_p3 }
  0x16   :  { %2266 = shalt.err (!%p2263_p7)
}
  0x17   :  { %s2478_s24 = smov 256   ;;  %s2479_s25 = smov 16  }
  0x18   :  { %45 = dma.hbm_to_vmem [thread:$0]  %s2762_s1, 65536, %s40_s16, [#allocation7], %s2478_s24, %s2478_s24, %s2479_s25  }
  0x19   :  { %s2480_s28 = smov [#allocation9]   ;;  %s2481_s30 = smov [#allocation12]  }
  0x1a   :  { %s61_s29 = sshll.u32 %s2480_s28, 4  ;;  %s84_s11 = sshll.u32 %s2481_s30, 4  ;;  %s62_s29 = int_to_ptr.vmem [resolvable:$true] %s61_s29  ;;  %s85_s11 = int_to_ptr.vmem [resolvable:$true] %s84_s11 }
  0x1b   :  { %s2267_s14 = scalar_lea.hbm %s2764_s3, 8192 }
  0x1c   :  { %p2268_p8 = scmp.ne.s32.totalorder %s2764_s3, %s2267_s14  ;;  %p2271_p9 = scmp.lt.u32.totalorder %s2267_s14, %s2764_s3 }
  0x1e   :  { %p2273_p10 = pnand %p2271_p9, %p2268_p8 }
  0x20   :  { %2276 = shalt.err (!%p2273_p10)
}
  0x21   :  { %s2277_s1 = scalar_lea.vmem %s62_s29, 8192  ;;  %p2282_p12 = scmp.lt.s32.totalorder %s62_s29, %s62_s29 }
  0x22   :  { %p2278_p11 = scmp.ne.s32.totalorder %s62_s29, %s2277_s1  ;;  %p2283_p13 = scmp.lt.s32.totalorder %s2277_s1, %s2277_s1 }
  0x24   :  { %p2284_p0 = por %p2283_p13, %p2282_p12 }
  0x26   :  { %p2285_p1 = pnand %p2284_p0, %p2278_p11 }
  0x28   :  { %2288 = shalt.err (!%p2285_p1)
}
  0x29   :  { %67 = dma.hbm_to_vmem [thread:$0]  %s2764_s3, 8192, %s62_s29, [#allocation10], %s2478_s24, %s2478_s24, %s2479_s25  }
  0x2a   :  { %s2289_s6 = scalar_lea.hbm %s2766_s5, 32 }
  0x2b   :  { %p2290_p2 = scmp.ne.s32.totalorder %s2766_s5, %s2289_s6  ;;  %p2293_p3 = scmp.lt.u32.totalorder %s2289_s6, %s2766_s5 }
  0x2d   :  { %p2295_p4 = pnand %p2293_p3, %p2290_p2 }
  0x2f   :  { %2298 = shalt.err (!%p2295_p4)
}
  0x30   :  { %s2299_s30 = scalar_lea.vmem %s85_s11, 32  ;;  %p2304_p6 = scmp.lt.s32.totalorder %s85_s11, %s85_s11 }
  0x31   :  { %p2300_p5 = scmp.ne.s32.totalorder %s85_s11, %s2299_s30  ;;  %p2305_p7 = scmp.lt.s32.totalorder %s2299_s30, %s2299_s30 }
  0x33   :  { %p2306_p8 = por %p2305_p7, %p2304_p6 }
  0x35   :  { %p2307_p9 = pnand %p2306_p8, %p2300_p5 }
  0x37   :  { %2310 = shalt.err (!%p2307_p9)
}
  0x38   :  { %87 = dma.hbm_to_vmem [thread:$0]  %s2766_s5, 32, %s85_s11, [#allocation13]  }
  0x39   :  { %s2482_s25 = smov [#allocation3]   ;;  %s2483_s12 = smov [#allocation8]  }
  0x3a   :  { %s30_s29 = sshll.u32 %s2482_s25, 4  ;;  %s52_s13 = sshll.u32 %s2483_s12, 4  ;;  %s31_s29 = int_to_ptr.vmem [resolvable:$true] %s30_s29  ;;  %s53_s13 = int_to_ptr.vmem [resolvable:$true] %s52_s13 }
  0x3b   :  { %s2311_s17 = scalar_lea.hbm %s2761_s0, 512 }
  0x3c   :  { %p2312_p10 = scmp.ne.s32.totalorder %s2761_s0, %s2311_s17  ;;  %p2315_p11 = scmp.lt.u32.totalorder %s2311_s17, %s2761_s0 }
  0x3e   :  { %p2317_p12 = pnand %p2315_p11, %p2312_p10 }
  0x40   :  { %2320 = shalt.err (!%p2317_p12)
}
  0x41   :  { %s2321_s5 = scalar_lea.vmem %s31_s29, 512  ;;  %p2326_p0 = scmp.lt.s32.totalorder %s31_s29, %s31_s29 }
  0x42   :  { %p2322_p13 = scmp.ne.s32.totalorder %s31_s29, %s2321_s5  ;;  %p2327_p1 = scmp.lt.s32.totalorder %s2321_s5, %s2321_s5 }
  0x44   :  { %p2328_p2 = por %p2327_p1, %p2326_p0 }
  0x46   :  { %p2329_p3 = pnand %p2328_p2, %p2322_p13 }
  0x48   :  { %2332 = shalt.err (!%p2329_p3)
}
  0x49   :  { %33 = dma.hbm_to_vmem [thread:$0]  %s2761_s0, 512, %s31_s29, [#allocation4]  }
  0x4a   :  { %s2333_s6 = scalar_lea.hbm %s2763_s2, 32 }
  0x4b   :  { %p2334_p4 = scmp.ne.s32.totalorder %s2763_s2, %s2333_s6  ;;  %p2337_p5 = scmp.lt.u32.totalorder %s2333_s6, %s2763_s2 }
  0x4d   :  { %p2339_p6 = pnand %p2337_p5, %p2334_p4 }
  0x4f   :  { %2342 = shalt.err (!%p2339_p6)
}
  0x50   :  { %s2343_s30 = scalar_lea.vmem %s53_s13, 32  ;;  %p2348_p8 = scmp.lt.s32.totalorder %s53_s13, %s53_s13 }
  0x51   :  { %p2344_p7 = scmp.ne.s32.totalorder %s53_s13, %s2343_s30  ;;  %p2349_p9 = scmp.lt.s32.totalorder %s2343_s30, %s2343_s30 }
  0x53   :  { %p2350_p10 = por %p2349_p9, %p2348_p8 }
  0x55   :  { %p2351_p11 = pnand %p2350_p10, %p2344_p7 }
  0x57   :  { %2354 = shalt.err (!%p2351_p11)
}
  0x58   :  { %55 = dma.hbm_to_vmem [thread:$0]  %s2763_s2, 32, %s53_s13, [#allocation7]  }
  0x59   :  { %s2484_s24 = smov [#allocation11]   ;;  %s2485_s29 = smov [#allocation14]  }
  0x5a   :  { %s74_s25 = sshll.u32 %s2484_s24, 4  ;;  %s96_s12 = sshll.u32 %s2485_s29, 4  ;;  %s75_s25 = int_to_ptr.vmem [resolvable:$true] %s74_s25  ;;  %s97_s12 = int_to_ptr.vmem [resolvable:$true] %s96_s12 }
  0x5b   :  { %s2355_s17 = scalar_lea.hbm %s2765_s4, 32 }
  0x5c   :  { %p2356_p12 = scmp.ne.s32.totalorder %s2765_s4, %s2355_s17  ;;  %p2359_p13 = scmp.lt.u32.totalorder %s2355_s17, %s2765_s4 }
  0x5e   :  { %p2361_p0 = pnand %p2359_p13, %p2356_p12 }
  0x60   :  { %2364 = shalt.err (!%p2361_p0)
}
  0x61   :  { %s2365_s2 = scalar_lea.vmem %s75_s25, 32  ;;  %p2370_p2 = scmp.lt.s32.totalorder %s75_s25, %s75_s25 }
  0x62   :  { %p2366_p1 = scmp.ne.s32.totalorder %s75_s25, %s2365_s2  ;;  %p2371_p3 = scmp.lt.s32.totalorder %s2365_s2, %s2365_s2 }
  0x64   :  { %p2372_p4 = por %p2371_p3, %p2370_p2 }
  0x66   :  { %p2373_p5 = pnand %p2372_p4, %p2366_p1 }
  0x68   :  { %2376 = shalt.err (!%p2373_p5)
}
  0x69   :  { %77 = dma.hbm_to_vmem [thread:$0]  %s2765_s4, 32, %s75_s25, [#allocation10]  }
  0x6a   :  { %s2377_s21 = scalar_lea.hbm %s2768_s7, 64 }
  0x6b   :  { %p2378_p6 = scmp.ne.s32.totalorder %s2768_s7, %s2377_s21  ;;  %p2381_p7 = scmp.lt.u32.totalorder %s2377_s21, %s2768_s7 }
  0x6d   :  { %p2383_p8 = pnand %p2381_p7, %p2378_p6 }
  0x6f   :  { %2386 = shalt.err (!%p2383_p8)
}
  0x70   :  { %s2387_s27 = scalar_lea.vmem %s97_s12, 64  ;;  %p2392_p10 = scmp.lt.s32.totalorder %s97_s12, %s97_s12 }
  0x71   :  { %p2388_p9 = scmp.ne.s32.totalorder %s97_s12, %s2387_s27  ;;  %p2393_p11 = scmp.lt.s32.totalorder %s2387_s27, %s2387_s27 }
  0x73   :  { %p2394_p12 = por %p2393_p11, %p2392_p10 }
  0x75   :  { %p2395_p13 = pnand %p2394_p12, %p2388_p9 }
  0x77   :  { %2398 = shalt.err (!%p2395_p13)
}
  0x78   :  { %99 = dma.hbm_to_vmem [thread:$0]  %s2768_s7, 64, %s97_s12, [#allocation13]  }
  0x79   :  { %2465 = dma.done.wait [#allocation4], 512  }
  0x7a   :  { %2466 = vsyncadd [#allocation4], 4294966784 }
  0x7b   :  { %2467 = dma.done.wait [#allocation7], 65568  }
  0x7c   :  { %2468 = vsyncadd [#allocation7], 4294901728 }
  0x7d   :  { %2469 = dma.done.wait [#allocation10], 8224  }
  0x7e   :  { %2470 = vsyncadd [#allocation10], 4294959072 }
  0x7f   :  { %2471 = dma.done.wait [#allocation13], 96  }
  0x80   :  { %2472 = vsyncadd [#allocation13], 4294967200  ;;  %v126_v1 = vld [vmem:[#allocation6 + $0x8] sm:$0xff]  ;;  %v128_v2 = vld [vmem:[#allocation6 + $0x18] sm:$0xff]  ;;  %vm1480_vm0 = vcmask 1041408   ;;  %s2489_s7 = smov [#allocation16]  }
  0x81   :  { %v318_v3 = vld [vmem:[#allocation6 + $0x608] sm:$0xff]  ;;  %v1613_v4 = vpack.c.bf16 %v128_v2, %v126_v1  ;;  %v320_v5 = vld [vmem:[#allocation6 + $0x618] sm:$0xff]  ;;  %v125_v6 = vld [vmem:[#allocation6] sm:$0xff]  ;;  %s1581_s30 = sshll.u32 %s2489_s7, 4  ;;  %s2490_s0 = smov [#allocation18]   ;;  %s1582_s30 = int_to_ptr.vmem [resolvable:$true] %s1581_s30 }
  0x82   :  { %v127_v7 = vld [vmem:[#allocation6 + $0x10] sm:$0xff]  ;;  %v1805_v8 = vpack.c.bf16 %v320_v5, %v318_v3  ;;  %v317_v10 = vld [vmem:[#allocation6 + $0x600] sm:$0xff]  ;;  %v130_v12 = vld [vmem:[#allocation6 + $0x28] sm:$0xff]  ;;  %s1591_s3 = sshll.u32 %s2490_s0, 4  ;;  %s2399_s24 = scalar_lea.vmem %s1582_s30, 64  ;;  %s1592_s3 = int_to_ptr.vmem [resolvable:$true] %s1591_s3 }
  0x83   :  { %v1615_v9 = vpack.c.bf16 %v127_v7, %v125_v6  ;;  %v319_v11 = vld [vmem:[#allocation6 + $0x610] sm:$0xff]  ;;  %1614 = vmatprep.subr.bf16.mxu1 %v1613_v4  ;;  %v132_v14 = vld [vmem:[#allocation6 + $0x38] sm:$0xff]  ;;  %v322_v15 = vld [vmem:[#allocation6 + $0x628] sm:$0xff]  ;;  %p2400_p0 = scmp.ne.s32.totalorder %s1582_s30, %s2399_s24  ;;  %p2404_p1 = scmp.lt.s32.totalorder %s1582_s30, %s1582_s30 }
  0x84   :  { %v1807_v13 = vpack.c.bf16 %v319_v11, %v317_v10  ;;  %v324_v16 = vld [vmem:[#allocation6 + $0x638] sm:$0xff]  ;;  %1806 = vmatprep.subr.bf16.mxu0 %v1805_v8  ;;  %v1617_v17 = vpack.c.bf16 %v132_v14, %v130_v12  ;;  %v129_v19 = vld [vmem:[#allocation6 + $0x20] sm:$0xff]  ;;  %v131_v20 = vld [vmem:[#allocation6 + $0x30] sm:$0xff]  ;;  %p2405_p2 = scmp.lt.s32.totalorder %s2399_s24, %s2399_s24 }
  0x85   :  { %1616 = vmatpush1.bf16.msra.mxu1 %v1615_v9  ;;  %v1809_v18 = vpack.c.bf16 %v324_v16, %v322_v15  ;;  %v321_v21 = vld [vmem:[#allocation6 + $0x620] sm:$0xff]  ;;  %v1619_v22 = vpack.c.bf16 %v131_v20, %v129_v19  ;;  %v323_v23 = vld [vmem:[#allocation6 + $0x630] sm:$0xff]  ;;  %v134_v24 = vld [vmem:[#allocation6 + $0x48] sm:$0xff] }
  0x86   :  { %1808 = vmatpush1.bf16.msra.mxu0 %v1807_v13  ;;  %v136_v25 = vld [vmem:[#allocation6 + $0x58] sm:$0xff]  ;;  %1618 = vmatprep.subr.bf16.mxu1 %v1617_v17  ;;  %v1811_v26 = vpack.c.bf16 %v323_v23, %v321_v21  ;;  %v326_v28 = vld [vmem:[#allocation6 + $0x648] sm:$0xff]  ;;  %v133_v30 = vld [vmem:[#allocation6 + $0x40] sm:$0xff]  ;;  %p2406_p3 = por %p2405_p2, %p2404_p1 }
  0x87   :  { %1810 = vmatprep.subr.bf16.mxu0 %v1809_v18  ;;  %v1621_v27 = vpack.c.bf16 %v136_v25, %v134_v24  ;;  %v328_v29 = vld [vmem:[#allocation6 + $0x658] sm:$0xff]  ;;  %v135_v32 = vld [vmem:[#allocation6 + $0x50] sm:$0xff]  ;;  %v325_v33 = vld [vmem:[#allocation6 + $0x640] sm:$0xff] }
  0x88   :  { %v1813_v31 = vpack.c.bf16 %v328_v29, %v326_v28  ;;  %v327_v34 = vld [vmem:[#allocation6 + $0x650] sm:$0xff]  ;;  %v1623_v35 = vpack.c.bf16 %v135_v32, %v133_v30  ;;  %v138_v36 = vld [vmem:[#allocation6 + $0x68] sm:$0xff]  ;;  %v140_v37 = vld [vmem:[#allocation6 + $0x78] sm:$0xff]  ;;  %p2407_p4 = pnand %p2406_p3, %p2400_p0 }
  0x89   :  { %1620 = vmatpush1.bf16.msra.mxu1 %v1619_v22  ;;  %v330_v38 = vld [vmem:[#allocation6 + $0x668] sm:$0xff]  ;;  %v1815_v39 = vpack.c.bf16 %v327_v34, %v325_v33  ;;  %v1625_v40 = vpack.c.bf16 %v140_v37, %v138_v36  ;;  %v332_v41 = vld [vmem:[#allocation6 + $0x678] sm:$0xff]  ;;  %v137_v42 = vld [vmem:[#allocation6 + $0x60] sm:$0xff] }
  0x8a   :  { %1812 = vmatpush1.bf16.msra.mxu0 %v1811_v26  ;;  %1622 = vmatprep.subr.bf16.mxu1 %v1621_v27  ;;  %v139_v43 = vld [vmem:[#allocation6 + $0x70] sm:$0xff]  ;;  %v1817_v44 = vpack.c.bf16 %v332_v41, %v330_v38  ;;  %v329_v45 = vld [vmem:[#allocation6 + $0x660] sm:$0xff]  ;;  %v142_v47 = vld [vmem:[#allocation6 + $0x88] sm:$0xff] }
  0x8b   :  { %1814 = vmatprep.subr.bf16.mxu0 %v1813_v31  ;;  %v331_v46 = vld [vmem:[#allocation6 + $0x670] sm:$0xff]  ;;  %v144_v48 = vld [vmem:[#allocation6 + $0x98] sm:$0xff]  ;;  %v334_v49 = vld [vmem:[#allocation6 + $0x688] sm:$0xff]  ;;  %v1627_v51 = vpack.c.bf16 %v139_v43, %v137_v42 }
  0x8c   :  { %v336_v50 = vld [vmem:[#allocation6 + $0x698] sm:$0xff]  ;;  %v1819_v52 = vpack.c.bf16 %v331_v46, %v329_v45  ;;  %v1629_v53 = vpack.c.bf16 %v144_v48, %v142_v47  ;;  %v141_v54 = vld [vmem:[#allocation6 + $0x80] sm:$0xff]  ;;  %v143_v55 = vld [vmem:[#allocation6 + $0x90] sm:$0xff]  ;;  %v639_v47 = vlaneseq  ;;  %v2486_v48 = vmov 1983009808  }
  0x8d   :  { %1624 = vmatpush1.bf16.msra.mxu1 %v1623_v35  ;;  %v333_v56 = vld [vmem:[#allocation6 + $0x680] sm:$0xff]  ;;  %v1821_v57 = vpack.c.bf16 %v336_v50, %v334_v49  ;;  %v335_v58 = vld [vmem:[#allocation6 + $0x690] sm:$0xff]  ;;  %v146_v59 = vld [vmem:[#allocation6 + $0xa8] sm:$0xff]  ;;  %v1631_v63 = vpack.c.bf16 %v143_v55, %v141_v54  ;;  %v655_v49 = vunpack.c.l.s4 %v2486_v48 }
  0x8e   :  { %1816 = vmatpush1.bf16.msra.mxu0 %v1815_v39  ;;  %1626 = vmatprep.subr.bf16.mxu1 %v1625_v40  ;;  %v148_v60 = vld [vmem:[#allocation6 + $0xb8] sm:$0xff]  ;;  %v338_v61 = vld [vmem:[#allocation6 + $0x6a8] sm:$0xff]  ;;  %v1823_v0 = vpack.c.bf16 %v335_v58, %v333_v56  ;;  %v145_v2 = vld [vmem:[#allocation6 + $0xa0] sm:$0xff] }
  0x8f   :  { %1818 = vmatprep.subr.bf16.mxu0 %v1817_v44  ;;  %v340_v62 = vld [vmem:[#allocation6 + $0x6b8] sm:$0xff]  ;;  %v1633_v1 = vpack.c.bf16 %v148_v60, %v146_v59  ;;  %v147_v3 = vld [vmem:[#allocation6 + $0xb0] sm:$0xff]  ;;  %v337_v4 = vld [vmem:[#allocation6 + $0x6a0] sm:$0xff] }
  0x90   :  { %v1825_v5 = vpack.c.bf16 %v340_v62, %v338_v61  ;;  %v339_v6 = vld [vmem:[#allocation6 + $0x6b0] sm:$0xff]  ;;  %v150_v7 = vld [vmem:[#allocation6 + $0xc8] sm:$0xff]  ;;  %v152_v8 = vld [vmem:[#allocation6 + $0xd8] sm:$0xff]  ;;  %v1635_v11 = vpack.c.bf16 %v147_v3, %v145_v2  ;;  %v2634_v62 = vshrl.u32 %v639_v47, 7 }
  0x91   :  { %1628 = vmatpush1.bf16.msra.mxu1 %v1627_v51  ;;  %v342_v9 = vld [vmem:[#allocation6 + $0x6c8] sm:$0xff]  ;;  %v344_v10 = vld [vmem:[#allocation6 + $0x6d8] sm:$0xff]  ;;  %v1827_v12 = vpack.c.bf16 %v339_v6, %v337_v4  ;;  %v1637_v13 = vpack.c.bf16 %v152_v8, %v150_v7  ;;  %v149_v14 = vld [vmem:[#allocation6 + $0xc0] sm:$0xff] }
  0x92   :  { %1820 = vmatpush1.bf16.msra.mxu0 %v1819_v52  ;;  %1630 = vmatprep.subr.bf16.mxu1 %v1629_v53  ;;  %v151_v15 = vld [vmem:[#allocation6 + $0xd0] sm:$0xff]  ;;  %v341_v16 = vld [vmem:[#allocation6 + $0x6c0] sm:$0xff]  ;;  %v1829_v17 = vpack.c.bf16 %v344_v10, %v342_v9  ;;  %v154_v19 = vld [vmem:[#allocation6 + $0xe8] sm:$0xff] }
  0x93   :  { %1822 = vmatprep.subr.bf16.mxu0 %v1821_v57  ;;  %v343_v18 = vld [vmem:[#allocation6 + $0x6d0] sm:$0xff]  ;;  %v156_v20 = vld [vmem:[#allocation6 + $0xf8] sm:$0xff]  ;;  %v346_v21 = vld [vmem:[#allocation6 + $0x6e8] sm:$0xff]  ;;  %v1639_v23 = vpack.c.bf16 %v151_v15, %v149_v14 }
  0x94   :  { %v348_v22 = vld [vmem:[#allocation6 + $0x6f8] sm:$0xff]  ;;  %v1831_v24 = vpack.c.bf16 %v343_v18, %v341_v16  ;;  %v1641_v25 = vpack.c.bf16 %v156_v20, %v154_v19  ;;  %v153_v26 = vld [vmem:[#allocation6 + $0xe0] sm:$0xff]  ;;  %v155_v27 = vld [vmem:[#allocation6 + $0xf0] sm:$0xff] }
  0x95   :  { %1632 = vmatpush1.bf16.msra.mxu1 %v1631_v63  ;;  %v345_v28 = vld [vmem:[#allocation6 + $0x6e0] sm:$0xff]  ;;  %v1833_v29 = vpack.c.bf16 %v348_v22, %v346_v21  ;;  %v347_v30 = vld [vmem:[#allocation6 + $0x6f0] sm:$0xff]  ;;  %v158_v31 = vld [vmem:[#allocation6 + $0x108] sm:$0xff]  ;;  %v1643_v35 = vpack.c.bf16 %v155_v27, %v153_v26  ;;  %v656_v63 = vunpack.c.0.s8 %v655_v49 }
  0x96   :  { %1824 = vmatpush1.bf16.msra.mxu0 %v1823_v0  ;;  %1634 = vmatprep.subr.bf16.mxu1 %v1633_v1  ;;  %v160_v32 = vld [vmem:[#allocation6 + $0x118] sm:$0xff]  ;;  %v350_v33 = vld [vmem:[#allocation6 + $0x708] sm:$0xff]  ;;  %v1835_v36 = vpack.c.bf16 %v347_v30, %v345_v28  ;;  %v157_v38 = vld [vmem:[#allocation6 + $0x100] sm:$0xff] }
  0x97   :  { %1826 = vmatprep.subr.bf16.mxu0 %v1825_v5  ;;  %v352_v34 = vld [vmem:[#allocation6 + $0x718] sm:$0xff]  ;;  %v1645_v37 = vpack.c.bf16 %v160_v32, %v158_v31  ;;  %v159_v39 = vld [vmem:[#allocation6 + $0x110] sm:$0xff]  ;;  %v349_v40 = vld [vmem:[#allocation6 + $0x700] sm:$0xff] }
  0x98   :  { %v1837_v41 = vpack.c.bf16 %v352_v34, %v350_v33  ;;  %v351_v42 = vld [vmem:[#allocation6 + $0x710] sm:$0xff]  ;;  %v162_v43 = vld [vmem:[#allocation6 + $0x128] sm:$0xff]  ;;  %v164_v44 = vld [vmem:[#allocation6 + $0x138] sm:$0xff]  ;;  %v1647_v50 = vpack.c.bf16 %v159_v39, %v157_v38 }
  0x99   :  { %1636 = vmatpush1.bf16.msra.mxu1 %v1635_v11  ;;  %v354_v45 = vld [vmem:[#allocation6 + $0x728] sm:$0xff]  ;;  %v356_v46 = vld [vmem:[#allocation6 + $0x738] sm:$0xff]  ;;  %v1839_v51 = vpack.c.bf16 %v351_v42, %v349_v40  ;;  %v1649_v52 = vpack.c.bf16 %v164_v44, %v162_v43  ;;  %v161_v53 = vld [vmem:[#allocation6 + $0x120] sm:$0xff] }
  0x9a   :  { %1828 = vmatpush1.bf16.msra.mxu0 %v1827_v12  ;;  %1638 = vmatprep.subr.bf16.mxu1 %v1637_v13  ;;  %v163_v54 = vld [vmem:[#allocation6 + $0x130] sm:$0xff]  ;;  %v353_v55 = vld [vmem:[#allocation6 + $0x720] sm:$0xff]  ;;  %v1841_v56 = vpack.c.bf16 %v356_v46, %v354_v45  ;;  %v166_v58 = vld [vmem:[#allocation6 + $0x148] sm:$0xff]  ;;  %v2637_v12 = vsub.s32 %v656_v63, %v2634_v62 }
  0x9b   :  { %1830 = vmatprep.subr.bf16.mxu0 %v1829_v17  ;;  %v355_v57 = vld [vmem:[#allocation6 + $0x730] sm:$0xff]  ;;  %v168_v59 = vld [vmem:[#allocation6 + $0x158] sm:$0xff]  ;;  %v358_v60 = vld [vmem:[#allocation6 + $0x748] sm:$0xff]  ;;  %v1651_v0 = vpack.c.bf16 %v163_v54, %v161_v53 }
  0x9c   :  { %v360_v61 = vld [vmem:[#allocation6 + $0x758] sm:$0xff]  ;;  %v1843_v1 = vpack.c.bf16 %v355_v57, %v353_v55  ;;  %v1653_v2 = vpack.c.bf16 %v168_v59, %v166_v58  ;;  %v165_v3 = vld [vmem:[#allocation6 + $0x140] sm:$0xff]  ;;  %v167_v4 = vld [vmem:[#allocation6 + $0x150] sm:$0xff] }
  0x9d   :  { %1640 = vmatpush1.bf16.msra.mxu1 %v1639_v23  ;;  %v357_v5 = vld [vmem:[#allocation6 + $0x740] sm:$0xff]  ;;  %v1845_v6 = vpack.c.bf16 %v360_v61, %v358_v60  ;;  %v359_v7 = vld [vmem:[#allocation6 + $0x750] sm:$0xff]  ;;  %v170_v8 = vld [vmem:[#allocation6 + $0x168] sm:$0xff]  ;;  %v1655_v13 = vpack.c.bf16 %v167_v4, %v165_v3 }
  0x9e   :  { %1832 = vmatpush1.bf16.msra.mxu0 %v1831_v24  ;;  %1642 = vmatprep.subr.bf16.mxu1 %v1641_v25  ;;  %v172_v9 = vld [vmem:[#allocation6 + $0x178] sm:$0xff]  ;;  %v362_v10 = vld [vmem:[#allocation6 + $0x768] sm:$0xff]  ;;  %v169_v14 = vld [vmem:[#allocation6 + $0x160] sm:$0xff]  ;;  %v1847_v15 = vpack.c.bf16 %v359_v7, %v357_v5 }
  0x9f   :  { %1834 = vmatprep.subr.bf16.mxu0 %v1833_v29  ;;  %v364_v11 = vld [vmem:[#allocation6 + $0x778] sm:$0xff]  ;;  %v1657_v16 = vpack.c.bf16 %v172_v9, %v170_v8  ;;  %v171_v17 = vld [vmem:[#allocation6 + $0x170] sm:$0xff]  ;;  %v361_v18 = vld [vmem:[#allocation6 + $0x760] sm:$0xff] }
  0xa0   :  { %v363_v19 = vld [vmem:[#allocation6 + $0x770] sm:$0xff]  ;;  %v1849_v20 = vpack.c.bf16 %v364_v11, %v362_v10  ;;  %v174_v21 = vld [vmem:[#allocation6 + $0x188] sm:$0xff]  ;;  %v176_v22 = vld [vmem:[#allocation6 + $0x198] sm:$0xff]  ;;  %v1659_v28 = vpack.c.bf16 %v171_v17, %v169_v14 }
  0xa1   :  { %1644 = vmatpush1.bf16.msra.mxu1 %v1643_v35  ;;  %v2639_v23 = vld [vmem:[#allocation3] sm:$0xff]  ;;  %v366_v24 = vld [vmem:[#allocation6 + $0x788] sm:$0xff]  ;;  %v368_v25 = vld [vmem:[#allocation6 + $0x798] sm:$0xff]  ;;  %v1851_v30 = vpack.c.bf16 %v363_v19, %v361_v18  ;;  %v1661_v31 = vpack.c.bf16 %v176_v22, %v174_v21 }
  0xa2   :  { %1836 = vmatpush1.bf16.msra.mxu0 %v1835_v36  ;;  %1646 = vmatprep.subr.bf16.mxu1 %v1645_v37  ;;  %v2643_v26 = vrot.slane %v2639_v23, %v2637_v12  ;;  %v2645_v27 = vld [vmem:[#allocation3 + $0x8] sm:$0xff]  ;;  %v173_v32 = vld [vmem:[#allocation6 + $0x180] sm:$0xff]  ;;  %v175_v33 = vld [vmem:[#allocation6 + $0x190] sm:$0xff]  ;;  %v1853_v36 = vpack.c.bf16 %v368_v25, %v366_v24  ;;  %v653_v14 = vcombine.high %v2639_v23, %v2639_v23 }
  0xa3   :  { %1838 = vmatprep.subr.bf16.mxu0 %v1837_v41  ;;  %v670_v29 = vcombine.high %v2645_v27, %v2645_v27  ;;  %v365_v34 = vld [vmem:[#allocation6 + $0x780] sm:$0xff]  ;;  %v367_v37 = vld [vmem:[#allocation6 + $0x790] sm:$0xff]  ;;  %v178_v38 = vld [vmem:[#allocation6 + $0x1a8] sm:$0xff]  ;;  %v1663_v43 = vpack.c.bf16 %v175_v33, %v173_v32 }
  0xa4   :  { %v668_v35 = vcombine.high %v2643_v26, %v2643_v26  ;;  %v180_v39 = vld [vmem:[#allocation6 + $0x1b8] sm:$0xff]  ;;  %v370_v41 = vld [vmem:[#allocation6 + $0x7a8] sm:$0xff]  ;;  %v1855_v45 = vpack.c.bf16 %v367_v37, %v365_v34  ;;  %v177_v47 = vld [vmem:[#allocation6 + $0x1a0] sm:$0xff]  ;;  %v2659_v23 = vrot.slane %v653_v14, %v2637_v12 }
  0xa5   :  { %1648 = vmatpush1.bf16.msra.mxu1 %v1647_v50  ;;  %v2652_v40 = vrot.slane %v670_v29, %v2637_v12  ;;  %v372_v42 = vld [vmem:[#allocation6 + $0x7b8] sm:$0xff]  ;;  %v1665_v46 = vpack.c.bf16 %v180_v39, %v178_v38  ;;  %v179_v48 = vld [vmem:[#allocation6 + $0x1b0] sm:$0xff]  ;;  %v369_v49 = vld [vmem:[#allocation6 + $0x7a0] sm:$0xff] }
  0xa6   :  { %1840 = vmatpush1.bf16.msra.mxu0 %v1839_v51  ;;  %1650 = vmatprep.subr.bf16.mxu1 %v1649_v52  ;;  %v1857_v50 = vpack.c.bf16 %v372_v42, %v370_v41  ;;  %v371_v51 = vld [vmem:[#allocation6 + $0x7b0] sm:$0xff]  ;;  %v182_v52 = vld [vmem:[#allocation6 + $0x1c8] sm:$0xff]  ;;  %v184_v53 = vld [vmem:[#allocation6 + $0x1d8] sm:$0xff] }
  0xa7   :  { %1842 = vmatprep.subr.bf16.mxu0 %v1841_v56  ;;  %801 = vmatprep.mubr.f32.mxu1 %v668_v35  ;;  %v686_v44 = vcombine.high %v2652_v40, %v2652_v40  ;;  %v374_v54 = vld [vmem:[#allocation6 + $0x7c8] sm:$0xff]  ;;  %v376_v55 = vld [vmem:[#allocation6 + $0x7d8] sm:$0xff]  ;;  %v1667_v56 = vpack.c.bf16 %v179_v48, %v177_v47  ;;  %v1859_v57 = vpack.c.bf16 %v371_v51, %v369_v49  ;;  %v181_v59 = vld [vmem:[#allocation6 + $0x1c0] sm:$0xff] }
  0xa8   :  { %v1669_v58 = vpack.c.bf16 %v184_v53, %v182_v52  ;;  %v183_v60 = vld [vmem:[#allocation6 + $0x1d0] sm:$0xff]  ;;  %v373_v61 = vld [vmem:[#allocation6 + $0x7c0] sm:$0xff]  ;;  %v1861_v63 = vpack.c.bf16 %v376_v55, %v374_v54  ;;  %v378_v3 = vld [vmem:[#allocation6 + $0x7e8] sm:$0xff] }
  0xa9   :  { %1652 = vmatpush1.bf16.msra.mxu1 %v1651_v0  ;;  %1014 = vmatprep.mubr.f32.mxu0 %v686_v44  ;;  %v375_v0 = vld [vmem:[#allocation6 + $0x7d0] sm:$0xff]  ;;  %v380_v4 = vld [vmem:[#allocation6 + $0x7f8] sm:$0xff]  ;;  %v1671_v5 = vpack.c.bf16 %v183_v60, %v181_v59  ;;  %v185_v8 = vld [vmem:[#allocation6 + $0x1e0] sm:$0xff] }
  0xaa   :  { %1844 = vmatpush1.bf16.msra.mxu0 %v1843_v1  ;;  %1654 = vmatprep.subr.bf16.mxu1 %v1653_v2  ;;  %v186_v1 = vld [vmem:[#allocation6 + $0x1e8] sm:$0xff]  ;;  %v188_v2 = vld [vmem:[#allocation6 + $0x1f8] sm:$0xff]  ;;  %v187_v9 = vld [vmem:[#allocation6 + $0x1f0] sm:$0xff]  ;;  %v1865_v11 = vpack.c.bf16 %v380_v4, %v378_v3 }
  0xab   :  { %1846 = vmatprep.subr.bf16.mxu0 %v1845_v6  ;;  %v1863_v6 = vpack.c.bf16 %v375_v0, %v373_v61  ;;  %v1673_v7 = vpack.c.bf16 %v188_v2, %v186_v1  ;;  %v377_v10 = vld [vmem:[#allocation6 + $0x7e0] sm:$0xff]  ;;  %v382_v17 = vld [vmem:[#allocation6 + $0x808] sm:$0xff]  ;;  %v384_v18 = vld [vmem:[#allocation6 + $0x818] sm:$0xff]  ;;  %v1675_v19 = vpack.c.bf16 %v187_v9, %v185_v8 }
  0xac   :  { %v189_v22 = vld [vmem:[#allocation6 + $0x200] sm:$0xff]  ;;  %v191_v24 = vld [vmem:[#allocation6 + $0x210] sm:$0xff]  ;;  %v386_v32 = vld [vmem:[#allocation6 + $0x828] sm:$0xff] }
  0xad   :  { %1656 = vmatpush1.bf16.msra.mxu1 %v1655_v13  ;;  %v379_v13 = vld [vmem:[#allocation6 + $0x7f0] sm:$0xff]  ;;  %v381_v25 = vld [vmem:[#allocation6 + $0x800] sm:$0xff]  ;;  %v388_v33 = vld [vmem:[#allocation6 + $0x838] sm:$0xff]  ;;  %v1679_v34 = vpack.c.bf16 %v191_v24, %v189_v22 }
  0xae   :  { %1848 = vmatpush1.bf16.msra.mxu0 %v1847_v15  ;;  %1658 = vmatprep.subr.bf16.mxu1 %v1657_v16  ;;  %v190_v15 = vld [vmem:[#allocation6 + $0x208] sm:$0xff]  ;;  %v192_v16 = vld [vmem:[#allocation6 + $0x218] sm:$0xff]  ;;  %v383_v29 = vld [vmem:[#allocation6 + $0x810] sm:$0xff]  ;;  %v1873_v41 = vpack.c.bf16 %v388_v33, %v386_v32 }
  0xaf   :  { %1850 = vmatprep.subr.bf16.mxu0 %v1849_v20  ;;  %v1867_v20 = vpack.c.bf16 %v379_v13, %v377_v10  ;;  %v1677_v21 = vpack.c.bf16 %v192_v16, %v190_v15  ;;  %v1871_v35 = vpack.c.bf16 %v383_v29, %v381_v25  ;;  %v193_v37 = vld [vmem:[#allocation6 + $0x220] sm:$0xff]  ;;  %v195_v38 = vld [vmem:[#allocation6 + $0x230] sm:$0xff]  ;;  %v200_v44 = vld [vmem:[#allocation6 + $0x258] sm:$0xff] }
  0xb0   :  { %v385_v39 = vld [vmem:[#allocation6 + $0x820] sm:$0xff]  ;;  %v387_v42 = vld [vmem:[#allocation6 + $0x830] sm:$0xff]  ;;  %v392_v47 = vld [vmem:[#allocation6 + $0x858] sm:$0xff]  ;;  %v1683_v48 = vpack.c.bf16 %v195_v38, %v193_v37 }
  0xb1   :  { %1660 = vmatpush1.bf16.msra.mxu1 %v1659_v28  ;;  %v1869_v28 = vpack.c.bf16 %v384_v18, %v382_v17  ;;  %v1875_v49 = vpack.c.bf16 %v387_v42, %v385_v39  ;;  %v197_v51 = vld [vmem:[#allocation6 + $0x240] sm:$0xff]  ;;  %v199_v52 = vld [vmem:[#allocation6 + $0x250] sm:$0xff]  ;;  %v206_v3 = vld [vmem:[#allocation6 + $0x288] sm:$0xff] }
  0xb2   :  { %1852 = vmatpush1.bf16.msra.mxu0 %v1851_v30  ;;  %1662 = vmatprep.subr.bf16.mxu1 %v1661_v31  ;;  %v194_v30 = vld [vmem:[#allocation6 + $0x228] sm:$0xff]  ;;  %v196_v31 = vld [vmem:[#allocation6 + $0x238] sm:$0xff]  ;;  %v389_v53 = vld [vmem:[#allocation6 + $0x840] sm:$0xff]  ;;  %v1687_v59 = vpack.c.bf16 %v199_v52, %v197_v51 }
  0xb3   :  { %1854 = vmatprep.subr.bf16.mxu0 %v1853_v36  ;;  %v1681_v36 = vpack.c.bf16 %v196_v31, %v194_v30  ;;  %v391_v55 = vld [vmem:[#allocation6 + $0x850] sm:$0xff]  ;;  %v201_v61 = vld [vmem:[#allocation6 + $0x260] sm:$0xff]  ;;  %v208_v4 = vld [vmem:[#allocation6 + $0x298] sm:$0xff] }
  0xb4   :  { %v393_v0 = vld [vmem:[#allocation6 + $0x860] sm:$0xff]  ;;  %v395_v2 = vld [vmem:[#allocation6 + $0x870] sm:$0xff]  ;;  %v1693_v9 = vpack.c.bf16 %v208_v4, %v206_v3  ;;  %v210_v16 = vld [vmem:[#allocation6 + $0x2a8] sm:$0xff] }
  0xb5   :  { %1664 = vmatpush1.bf16.msra.mxu1 %v1663_v43  ;;  %v198_v43 = vld [vmem:[#allocation6 + $0x248] sm:$0xff]  ;;  %v1883_v8 = vpack.c.bf16 %v395_v2, %v393_v0  ;;  %v205_v10 = vld [vmem:[#allocation6 + $0x280] sm:$0xff]  ;;  %v399_v15 = vld [vmem:[#allocation6 + $0x890] sm:$0xff] }
  0xb6   :  { %1856 = vmatpush1.bf16.msra.mxu0 %v1855_v45  ;;  %1666 = vmatprep.subr.bf16.mxu1 %v1665_v46  ;;  %v669_v45 = vcombine.high %v2659_v23, %v2659_v23  ;;  %v390_v46 = vld [vmem:[#allocation6 + $0x848] sm:$0xff]  ;;  %v397_v13 = vld [vmem:[#allocation6 + $0x880] sm:$0xff]  ;;  %v212_v17 = vld [vmem:[#allocation6 + $0x2b8] sm:$0xff] }
  0xb7   :  { %1858 = vmatprep.subr.bf16.mxu0 %v1857_v50  ;;  %v1685_v50 = vpack.c.bf16 %v200_v44, %v198_v43  ;;  %v1877_v54 = vpack.c.bf16 %v392_v47, %v390_v46  ;;  %v402_v18 = vld [vmem:[#allocation6 + $0x8a8] sm:$0xff]  ;;  %v1697_v22 = vpack.c.bf16 %v212_v17, %v210_v16  ;;  %v209_v24 = vld [vmem:[#allocation6 + $0x2a0] sm:$0xff]  ;;  %v211_v25 = vld [vmem:[#allocation6 + $0x2b0] sm:$0xff] }
  0xb8   :  { %v403_v30 = vld [vmem:[#allocation6 + $0x8b0] sm:$0xff]  ;;  %v214_v31 = vld [vmem:[#allocation6 + $0x2c8] sm:$0xff]  ;;  %v216_v32 = vld [vmem:[#allocation6 + $0x2d8] sm:$0xff] }
  0xb9   :  { %1668 = vmatpush1.bf16.msra.mxu1 %v1667_v56  ;;  %v202_v56 = vld [vmem:[#allocation6 + $0x268] sm:$0xff]  ;;  %v1701_v38 = vpack.c.bf16 %v216_v32, %v214_v31  ;;  %v215_v39 = vld [vmem:[#allocation6 + $0x2d0] sm:$0xff]  ;;  %v413_v3 = vld [vmem:[#allocation6 + $0x900] sm:$0xff] }
  0xba   :  { %1860 = vmatpush1.bf16.msra.mxu0 %v1859_v57  ;;  %1670 = vmatprep.subr.bf16.mxu1 %v1669_v58  ;;  %v204_v57 = vld [vmem:[#allocation6 + $0x278] sm:$0xff]  ;;  %v406_v33 = vld [vmem:[#allocation6 + $0x8c8] sm:$0xff]  ;;  %v407_v42 = vld [vmem:[#allocation6 + $0x8d0] sm:$0xff] }
  0xbb   :  { %1862 = vmatprep.subr.bf16.mxu0 %v1861_v63  ;;  %v396_v58 = vld [vmem:[#allocation6 + $0x878] sm:$0xff]  ;;  %v1689_v60 = vpack.c.bf16 %v204_v57, %v202_v56  ;;  %v203_v63 = vld [vmem:[#allocation6 + $0x270] sm:$0xff]  ;;  %v218_v44 = vld [vmem:[#allocation6 + $0x2e8] sm:$0xff] }
  0xbc   :  { %v2665_v46 = vld [vmem:[#allocation3 + $0x10] sm:$0xff]  ;;  %v410_v47 = vld [vmem:[#allocation6 + $0x8e8] sm:$0xff]  ;;  %v417_v16 = vld [vmem:[#allocation6 + $0x920] sm:$0xff] }
  0xbd   :  { %1672 = vmatpush1.bf16.msra.mxu1 %v1671_v5  ;;  %v398_v5 = vld [vmem:[#allocation6 + $0x888] sm:$0xff]  ;;  %v223_v2 = vld [vmem:[#allocation6 + $0x310] sm:$0xff]  ;;  %v421_v31 = vld [vmem:[#allocation6 + $0x940] sm:$0xff] }
  0xbe   :  { %1864 = vmatpush1.bf16.msra.mxu0 %v1863_v6  ;;  %1674 = vmatprep.subr.bf16.mxu1 %v1673_v7  ;;  %v400_v6 = vld [vmem:[#allocation6 + $0x898] sm:$0xff]  ;;  %v1691_v7 = vpack.c.bf16 %v203_v63, %v201_v61 }
  0xbf   :  { %1866 = vmatprep.subr.bf16.mxu0 %v1865_v11  ;;  %v207_v11 = vld [vmem:[#allocation6 + $0x290] sm:$0xff]  ;;  %v1885_v14 = vpack.c.bf16 %v400_v6, %v398_v5  ;;  %v226_v6 = vld [vmem:[#allocation6 + $0x328] sm:$0xff] }
  0xc0   :  { %v415_v5 = vld [vmem:[#allocation6 + $0x910] sm:$0xff] }
  0xc1   :  { %1676 = vmatpush1.bf16.msra.mxu1 %v1675_v19  ;;  %v404_v19 = vld [vmem:[#allocation6 + $0x8b8] sm:$0xff] }
  0xc2   :  { %1868 = vmatpush1.bf16.msra.mxu0 %v1867_v20  ;;  %1678 = vmatprep.subr.bf16.mxu1 %v1677_v21  ;;  %v1695_v20 = vpack.c.bf16 %v207_v11, %v205_v10  ;;  %v1887_v21 = vpack.c.bf16 %v399_v15, %v397_v13  ;;  %v1889_v29 = vpack.c.bf16 %v404_v19, %v402_v18  ;;  %v227_v15 = vld [vmem:[#allocation6 + $0x330] sm:$0xff]  ;;  %v230_v19 = vld [vmem:[#allocation6 + $0x348] sm:$0xff] }
  0xc3   :  { %1870 = vmatprep.subr.bf16.mxu0 %v1869_v28  ;;  %v401_v28 = vld [vmem:[#allocation6 + $0x8a0] sm:$0xff]  ;;  %v1903_v11 = vpack.c.bf16 %v415_v5, %v413_v3  ;;  %v419_v18 = vld [vmem:[#allocation6 + $0x930] sm:$0xff] }
  0xc4   :  { %802 = vmatmul.mubr.f32.vlgmr.msra.gmra.mrb[0].mxu1 %v2643_v26  ;;  %v394_v26 = vld [vmem:[#allocation6 + $0x868] sm:$0xff]  ;;  %v1891_v37 = vpack.c.bf16 %v403_v30, %v401_v28  ;;  %v231_v30 = vld [vmem:[#allocation6 + $0x350] sm:$0xff]  ;;  %v241_v3 = vld [vmem:[#allocation6 + $0x3a0] sm:$0xff] }
  0xc5   :  { %1680 = vmatpush1.bf16.msra.mxu1 %v1679_v34  ;;  %1015 = vmatmul.mubr.f32.vlgmr.msra.gmra.mrb[0].mxu0 %v2652_v40  ;;  %v1879_v40 = vpack.c.bf16 %v391_v55, %v389_v53  ;;  %v1881_v1 = vpack.c.bf16 %v396_v58, %v394_v26  ;;  %v408_v34 = vld [vmem:[#allocation6 + $0x8d8] sm:$0xff]  ;;  %v217_v53 = vld [vmem:[#allocation6 + $0x2e0] sm:$0xff]  ;;  %v411_v26 = vld [vmem:[#allocation6 + $0x8f0] sm:$0xff] }
  0xc6   :  { %1872 = vmatpush1.bf16.msra.mxu0 %v1871_v35  ;;  %1682 = vmatprep.subr.bf16.mxu1 %v1681_v36  ;;  %v1699_v35 = vpack.c.bf16 %v211_v25, %v209_v24  ;;  %v213_v36 = vld [vmem:[#allocation6 + $0x2c0] sm:$0xff]  ;;  %v1893_v43 = vpack.c.bf16 %v408_v34, %v406_v33  ;;  %v222_v58 = vld [vmem:[#allocation6 + $0x308] sm:$0xff]  ;;  %v1907_v25 = vpack.c.bf16 %v419_v18, %v417_v16  ;;  %v423_v33 = vld [vmem:[#allocation6 + $0x950] sm:$0xff] }
  0xc7   :  { %1874 = vmatprep.subr.bf16.mxu0 %v1873_v41  ;;  %872 = vmatprep.mubr.f32.mxu1 %v669_v45  ;;  %v405_v41 = vld [vmem:[#allocation6 + $0x8c0] sm:$0xff]  ;;  %v220_v45 = vld [vmem:[#allocation6 + $0x2f8] sm:$0xff]  ;;  %v234_v34 = vld [vmem:[#allocation6 + $0x368] sm:$0xff] }
  0xc8   :  { %v1895_v51 = vpack.c.bf16 %v407_v42, %v405_v41  ;;  %v1705_v52 = vpack.c.bf16 %v220_v45, %v218_v44  ;;  %v409_v55 = vld [vmem:[#allocation6 + $0x8e0] sm:$0xff] }
  0xc9   :  { %1684 = vmatpush1.bf16.msra.mxu1 %v1683_v48  ;;  %v412_v48 = vld [vmem:[#allocation6 + $0x8f8] sm:$0xff]  ;;  %v1899_v63 = vpack.c.bf16 %v411_v26, %v409_v55  ;;  %v233_v42 = vld [vmem:[#allocation6 + $0x360] sm:$0xff] }
  0xca   :  { %1876 = vmatpush1.bf16.msra.mxu0 %v1875_v49  ;;  %1686 = vmatprep.subr.bf16.mxu1 %v1685_v50  ;;  %v2669_v49 = vrot.slane %v2665_v46, %v2637_v12  ;;  %v1703_v50 = vpack.c.bf16 %v215_v39, %v213_v36  ;;  %v1897_v57 = vpack.c.bf16 %v412_v48, %v410_v47  ;;  %v426_v36 = vld [vmem:[#allocation6 + $0x968] sm:$0xff]  ;;  %v425_v44 = vld [vmem:[#allocation6 + $0x960] sm:$0xff]  ;;  %v427_v47 = vld [vmem:[#allocation6 + $0x970] sm:$0xff] }
  0xcb   :  { %1878 = vmatprep.subr.bf16.mxu0 %v1877_v54  ;;  %v219_v54 = vld [vmem:[#allocation6 + $0x2f0] sm:$0xff]  ;;  %v1911_v39 = vpack.c.bf16 %v423_v33, %v421_v31  ;;  %v238_v48 = vld [vmem:[#allocation6 + $0x388] sm:$0xff]  ;;  %v429_v26 = vld [vmem:[#allocation6 + $0x980] sm:$0xff] }
  0xcc   :  { %v702_v56 = vcombine.high %v2669_v49, %v2669_v49  ;;  %v1707_v61 = vpack.c.bf16 %v219_v54, %v217_v53  ;;  %v1915_v54 = vpack.c.bf16 %v427_v47, %v425_v44  ;;  %v433_v5 = vld [vmem:[#allocation6 + $0x9a0] sm:$0xff]  ;;  %v255_v47 = vld [vmem:[#allocation6 + $0x410] sm:$0xff] }
  0xcd   :  { %1688 = vmatpush1.bf16.msra.mxu1 %v1687_v59  ;;  %v224_v59 = vld [vmem:[#allocation6 + $0x318] sm:$0xff]  ;;  %v245_v16 = vld [vmem:[#allocation6 + $0x3c0] sm:$0xff] }
  0xce   :  { %1880 = vmatpush1.bf16.msra.mxu0 %v1879_v40  ;;  %1690 = vmatprep.subr.bf16.mxu1 %v1689_v60  ;;  %v414_v40 = vld [vmem:[#allocation6 + $0x908] sm:$0xff]  ;;  %v416_v60 = vld [vmem:[#allocation6 + $0x918] sm:$0xff]  ;;  %v1709_v0 = vpack.c.bf16 %v224_v59, %v222_v58  ;;  %v431_v59 = vld [vmem:[#allocation6 + $0x990] sm:$0xff] }
  0xcf   :  { %1882 = vmatprep.subr.bf16.mxu0 %v1881_v1  ;;  %1085 = vmatprep.mubr.f32.mxu0 %v702_v56  ;;  %v221_v1 = vld [vmem:[#allocation6 + $0x300] sm:$0xff]  ;;  %v1901_v4 = vpack.c.bf16 %v416_v60, %v414_v40  ;;  %v242_v40 = vld [vmem:[#allocation6 + $0x3a8] sm:$0xff]  ;;  %v244_v60 = vld [vmem:[#allocation6 + $0x3b8] sm:$0xff] }
  0xd0   :  { %v1711_v10 = vpack.c.bf16 %v223_v2, %v221_v1  ;;  %v237_v56 = vld [vmem:[#allocation6 + $0x380] sm:$0xff]  ;;  %v1919_v1 = vpack.c.bf16 %v431_v59, %v429_v26  ;;  %v1729_v2 = vpack.c.bf16 %v244_v60, %v242_v40  ;;  %v259_v40 = vld [vmem:[#allocation6 + $0x430] sm:$0xff] }
  0xd1   :  { %1692 = vmatpush1.bf16.msra.mxu1 %v1691_v7  ;;  %v228_v7 = vld [vmem:[#allocation6 + $0x338] sm:$0xff]  ;;  %v437_v18 = vld [vmem:[#allocation6 + $0x9c0] sm:$0xff] }
  0xd2   :  { %1884 = vmatpush1.bf16.msra.mxu0 %v1883_v8  ;;  %1694 = vmatprep.subr.bf16.mxu1 %v1693_v9  ;;  %v418_v8 = vld [vmem:[#allocation6 + $0x928] sm:$0xff]  ;;  %v420_v9 = vld [vmem:[#allocation6 + $0x938] sm:$0xff]  ;;  %v1713_v13 = vpack.c.bf16 %v228_v7, %v226_v6  ;;  %v435_v7 = vld [vmem:[#allocation6 + $0x9b0] sm:$0xff] }
  0xd3   :  { %1886 = vmatprep.subr.bf16.mxu0 %v1885_v14  ;;  %v225_v14 = vld [vmem:[#allocation6 + $0x320] sm:$0xff]  ;;  %v1905_v17 = vpack.c.bf16 %v420_v9, %v418_v8  ;;  %v246_v8 = vld [vmem:[#allocation6 + $0x3c8] sm:$0xff]  ;;  %v248_v9 = vld [vmem:[#allocation6 + $0x3d8] sm:$0xff] }
  0xd4   :  { %v1715_v24 = vpack.c.bf16 %v227_v15, %v225_v14  ;;  %v1923_v14 = vpack.c.bf16 %v435_v7, %v433_v5  ;;  %v1733_v15 = vpack.c.bf16 %v248_v9, %v246_v8  ;;  %v249_v31 = vld [vmem:[#allocation6 + $0x3e0] sm:$0xff]  ;;  %v263_v9 = vld [vmem:[#allocation6 + $0x450] sm:$0xff] }
  0xd5   :  { %1696 = vmatpush1.bf16.msra.mxu1 %v1695_v20  ;;  %v232_v20 = vld [vmem:[#allocation6 + $0x358] sm:$0xff]  ;;  %v441_v33 = vld [vmem:[#allocation6 + $0x9e0] sm:$0xff] }
  0xd6   :  { %1888 = vmatpush1.bf16.msra.mxu0 %v1887_v21  ;;  %1698 = vmatprep.subr.bf16.mxu1 %v1697_v22  ;;  %v422_v21 = vld [vmem:[#allocation6 + $0x948] sm:$0xff]  ;;  %v424_v22 = vld [vmem:[#allocation6 + $0x958] sm:$0xff]  ;;  %v1717_v28 = vpack.c.bf16 %v232_v20, %v230_v19  ;;  %v439_v20 = vld [vmem:[#allocation6 + $0x9d0] sm:$0xff] }
  0xd7   :  { %1890 = vmatprep.subr.bf16.mxu0 %v1889_v29  ;;  %v229_v29 = vld [vmem:[#allocation6 + $0x340] sm:$0xff]  ;;  %v1909_v32 = vpack.c.bf16 %v424_v22, %v422_v21  ;;  %v250_v21 = vld [vmem:[#allocation6 + $0x3e8] sm:$0xff]  ;;  %v252_v22 = vld [vmem:[#allocation6 + $0x3f8] sm:$0xff] }
  0xd8   :  { %v257_v59 = vld [vmem:[#allocation6 + $0x420] sm:$0xff] }
  0xd9   :  { %1700 = vmatpush1.bf16.msra.mxu1 %v1699_v35  ;;  %v236_v35 = vld [vmem:[#allocation6 + $0x378] sm:$0xff]  ;;  %v449_v60 = vld [vmem:[#allocation6 + $0xa20] sm:$0xff]  ;;  %v1747_v5 = vpack.c.bf16 %v259_v40, %v257_v59 }
  0xda   :  { %1892 = vmatpush1.bf16.msra.mxu0 %v1891_v37  ;;  %1702 = vmatprep.subr.bf16.mxu1 %v1701_v38  ;;  %v428_v37 = vld [vmem:[#allocation6 + $0x978] sm:$0xff]  ;;  %v1719_v38 = vpack.c.bf16 %v231_v30, %v229_v29  ;;  %v1721_v41 = vpack.c.bf16 %v236_v35, %v234_v34  ;;  %v1927_v29 = vpack.c.bf16 %v439_v20, %v437_v18  ;;  %v443_v35 = vld [vmem:[#allocation6 + $0x9f0] sm:$0xff]  ;;  %v261_v8 = vld [vmem:[#allocation6 + $0x440] sm:$0xff] }
  0xdb   :  { %1894 = vmatprep.subr.bf16.mxu0 %v1893_v43  ;;  %v235_v43 = vld [vmem:[#allocation6 + $0x370] sm:$0xff]  ;;  %v1913_v45 = vpack.c.bf16 %v428_v37, %v426_v36  ;;  %v1737_v30 = vpack.c.bf16 %v252_v22, %v250_v21  ;;  %v254_v36 = vld [vmem:[#allocation6 + $0x408] sm:$0xff]  ;;  %v256_v37 = vld [vmem:[#allocation6 + $0x418] sm:$0xff] }
  0xdc   :  { %v1723_v53 = vpack.c.bf16 %v235_v43, %v233_v42  ;;  %v1931_v43 = vpack.c.bf16 %v443_v35, %v441_v33  ;;  %v1741_v44 = vpack.c.bf16 %v256_v37, %v254_v36  ;;  %v267_v20 = vld [vmem:[#allocation6 + $0x470] sm:$0xff]  ;;  %v457_v21 = vld [vmem:[#allocation6 + $0xa60] sm:$0xff] }
  0xdd   :  { %1704 = vmatpush1.bf16.msra.mxu1 %v1703_v50  ;;  %v240_v50 = vld [vmem:[#allocation6 + $0x398] sm:$0xff]  ;;  %v271_v35 = vld [vmem:[#allocation6 + $0x490] sm:$0xff]  ;;  %v461_v36 = vld [vmem:[#allocation6 + $0xa80] sm:$0xff] }
  0xde   :  { %1896 = vmatpush1.bf16.msra.mxu0 %v1895_v51  ;;  %1706 = vmatprep.subr.bf16.mxu1 %v1705_v52  ;;  %v430_v51 = vld [vmem:[#allocation6 + $0x988] sm:$0xff]  ;;  %v432_v52 = vld [vmem:[#allocation6 + $0x998] sm:$0xff]  ;;  %v1725_v55 = vpack.c.bf16 %v240_v50, %v238_v48  ;;  %v445_v48 = vld [vmem:[#allocation6 + $0xa00] sm:$0xff] }
  0xdf   :  { %1898 = vmatprep.subr.bf16.mxu0 %v1897_v57  ;;  %v239_v57 = vld [vmem:[#allocation6 + $0x390] sm:$0xff]  ;;  %v1917_v58 = vpack.c.bf16 %v432_v52, %v430_v51  ;;  %v258_v52 = vld [vmem:[#allocation6 + $0x428] sm:$0xff] }
  0xe0   :  { %v447_v51 = vld [vmem:[#allocation6 + $0xa10] sm:$0xff] }
  0xe1   :  { %1708 = vmatpush1.bf16.msra.mxu1 %v1707_v61  ;;  %v434_v61 = vld [vmem:[#allocation6 + $0x9a8] sm:$0xff]  ;;  %v1935_v26 = vpack.c.bf16 %v447_v51, %v445_v48  ;;  %v273_v48 = vld [vmem:[#allocation6 + $0x4a0] sm:$0xff] }
  0xe2   :  { %1900 = vmatpush1.bf16.msra.mxu0 %v1899_v63  ;;  %1710 = vmatprep.subr.bf16.mxu1 %v1709_v0  ;;  %v436_v63 = vld [vmem:[#allocation6 + $0x9b8] sm:$0xff]  ;;  %v1727_v0 = vpack.c.bf16 %v239_v57, %v237_v56  ;;  %v465_v51 = vld [vmem:[#allocation6 + $0xaa0] sm:$0xff] }
  0xe3   :  { %1902 = vmatprep.subr.bf16.mxu0 %v1901_v4  ;;  %v243_v4 = vld [vmem:[#allocation6 + $0x3b0] sm:$0xff]  ;;  %v1921_v6 = vpack.c.bf16 %v436_v63, %v434_v61 }
  0xe4   :  { %v451_v63 = vld [vmem:[#allocation6 + $0xa30] sm:$0xff] }
  0xe5   :  { %1712 = vmatpush1.bf16.msra.mxu1 %v1711_v10  ;;  %v438_v10 = vld [vmem:[#allocation6 + $0x9c8] sm:$0xff] }
  0xe6   :  { %1904 = vmatpush1.bf16.msra.mxu0 %v1903_v11  ;;  %1714 = vmatprep.subr.bf16.mxu1 %v1713_v13  ;;  %v440_v11 = vld [vmem:[#allocation6 + $0x9d8] sm:$0xff]  ;;  %v1731_v13 = vpack.c.bf16 %v243_v4, %v241_v3 }
  0xe7   :  { %1906 = vmatprep.subr.bf16.mxu0 %v1905_v17  ;;  %v247_v17 = vld [vmem:[#allocation6 + $0x3d0] sm:$0xff]  ;;  %v1925_v19 = vpack.c.bf16 %v440_v11, %v438_v10  ;;  %v456_v3 = vld [vmem:[#allocation6 + $0xa58] sm:$0xff]  ;;  %v453_v10 = vld [vmem:[#allocation6 + $0xa40] sm:$0xff] }
  0xe9   :  { %1716 = vmatpush1.bf16.msra.mxu1 %v1715_v24  ;;  %v442_v24 = vld [vmem:[#allocation6 + $0x9e8] sm:$0xff] }
  0xea   :  { %1908 = vmatpush1.bf16.msra.mxu0 %v1907_v25  ;;  %1718 = vmatprep.subr.bf16.mxu1 %v1717_v28  ;;  %v444_v25 = vld [vmem:[#allocation6 + $0x9f8] sm:$0xff]  ;;  %v1735_v28 = vpack.c.bf16 %v247_v17, %v245_v16  ;;  %v1751_v17 = vpack.c.bf16 %v263_v9, %v261_v8  ;;  %v281_v8 = vld [vmem:[#allocation6 + $0x4e0] sm:$0xff]  ;;  %v283_v9 = vld [vmem:[#allocation6 + $0x4f0] sm:$0xff] }
  0xeb   :  { %1910 = vmatprep.subr.bf16.mxu0 %v1909_v32  ;;  %v251_v32 = vld [vmem:[#allocation6 + $0x3f0] sm:$0xff]  ;;  %v1929_v34 = vpack.c.bf16 %v444_v25, %v442_v24  ;;  %v460_v16 = vld [vmem:[#allocation6 + $0xa78] sm:$0xff]  ;;  %v270_v25 = vld [vmem:[#allocation6 + $0x488] sm:$0xff] }
  0xec   :  { %v1739_v42 = vpack.c.bf16 %v251_v32, %v249_v31  ;;  %v459_v24 = vld [vmem:[#allocation6 + $0xa70] sm:$0xff] }
  0xed   :  { %1720 = vmatpush1.bf16.msra.mxu1 %v1719_v38  ;;  %v446_v38 = vld [vmem:[#allocation6 + $0xa08] sm:$0xff]  ;;  %v1947_v32 = vpack.c.bf16 %v459_v24, %v457_v21  ;;  %v477_v21 = vld [vmem:[#allocation6 + $0xb00] sm:$0xff]  ;;  %v479_v24 = vld [vmem:[#allocation6 + $0xb10] sm:$0xff] }
  0xee   :  { %1912 = vmatpush1.bf16.msra.mxu0 %v1911_v39  ;;  %1722 = vmatprep.subr.bf16.mxu1 %v1721_v41  ;;  %v448_v39 = vld [vmem:[#allocation6 + $0xa18] sm:$0xff]  ;;  %v687_v41 = vcombine.high %v2665_v46, %v2665_v46 }
  0xef   :  { %1914 = vmatprep.subr.bf16.mxu0 %v1913_v45  ;;  %v253_v45 = vld [vmem:[#allocation6 + $0x400] sm:$0xff]  ;;  %v1933_v50 = vpack.c.bf16 %v448_v39, %v446_v38  ;;  %v452_v46 = vld [vmem:[#allocation6 + $0xa38] sm:$0xff]  ;;  %v463_v38 = vld [vmem:[#allocation6 + $0xa90] sm:$0xff] }
  0xf0   :  { %v2680_v56 = vrot.slane %v687_v41, %v2637_v12  ;;  %v1743_v57 = vpack.c.bf16 %v255_v47, %v253_v45  ;;  %v274_v39 = vld [vmem:[#allocation6 + $0x4a8] sm:$0xff]  ;;  %v276_v41 = vld [vmem:[#allocation6 + $0x4b8] sm:$0xff]  ;;  %v1951_v45 = vpack.c.bf16 %v463_v38, %v461_v36  ;;  %v481_v36 = vld [vmem:[#allocation6 + $0xb20] sm:$0xff] }
  0xf1   :  { %1724 = vmatpush1.bf16.msra.mxu1 %v1723_v53  ;;  %v260_v53 = vld [vmem:[#allocation6 + $0x438] sm:$0xff]  ;;  %v1761_v47 = vpack.c.bf16 %v276_v41, %v274_v39  ;;  %v483_v38 = vld [vmem:[#allocation6 + $0xb30] sm:$0xff]  ;;  %v294_v39 = vld [vmem:[#allocation6 + $0x548] sm:$0xff] }
  0xf2   :  { %1916 = vmatpush1.bf16.msra.mxu0 %v1915_v54  ;;  %1726 = vmatprep.subr.bf16.mxu1 %v1725_v55  ;;  %v2677_v54 = vrot.slane %v2645_v27, %v2637_v12  ;;  %v450_v55 = vld [vmem:[#allocation6 + $0xa28] sm:$0xff]  ;;  %v264_v27 = vld [vmem:[#allocation6 + $0x458] sm:$0xff]  ;;  %v703_v4 = vcombine.high %v2680_v56, %v2680_v56 }
  0xf3   :  { %1918 = vmatprep.subr.bf16.mxu0 %v1917_v58  ;;  %v1745_v58 = vpack.c.bf16 %v260_v53, %v258_v52  ;;  %v1937_v61 = vpack.c.bf16 %v452_v46, %v450_v55  ;;  %v467_v53 = vld [vmem:[#allocation6 + $0xab0] sm:$0xff]  ;;  %v278_v55 = vld [vmem:[#allocation6 + $0x4c8] sm:$0xff]  ;;  %v280_v46 = vld [vmem:[#allocation6 + $0x4d8] sm:$0xff] }
  0xf4   :  { %v1955_v59 = vpack.c.bf16 %v467_v53, %v465_v51  ;;  %v1765_v40 = vpack.c.bf16 %v280_v46, %v278_v55  ;;  %v296_v41 = vld [vmem:[#allocation6 + $0x558] sm:$0xff]  ;;  %v485_v51 = vld [vmem:[#allocation6 + $0xb40] sm:$0xff]  ;;  %v487_v53 = vld [vmem:[#allocation6 + $0xb50] sm:$0xff] }
  0xf5   :  { %1728 = vmatpush1.bf16.msra.mxu1 %v1727_v0  ;;  %v262_v0 = vld [vmem:[#allocation6 + $0x448] sm:$0xff]  ;;  %v300_v46 = vld [vmem:[#allocation6 + $0x578] sm:$0xff] }
  0xf6   :  { %1920 = vmatpush1.bf16.msra.mxu0 %v1919_v1  ;;  %1730 = vmatprep.subr.bf16.mxu1 %v1729_v2  ;;  %v685_v1 = vcombine.high %v2677_v54, %v2677_v54  ;;  %v454_v2 = vld [vmem:[#allocation6 + $0xa48] sm:$0xff]  ;;  %v1749_v7 = vpack.c.bf16 %v264_v27, %v262_v0  ;;  %v471_v27 = vld [vmem:[#allocation6 + $0xad0] sm:$0xff] }
  0xf7   :  { %1922 = vmatprep.subr.bf16.mxu0 %v1921_v6  ;;  %v1939_v6 = vpack.c.bf16 %v451_v63, %v449_v60  ;;  %v1941_v11 = vpack.c.bf16 %v456_v3, %v454_v2  ;;  %v277_v60 = vld [vmem:[#allocation6 + $0x4c0] sm:$0xff]  ;;  %v284_v2 = vld [vmem:[#allocation6 + $0x4f8] sm:$0xff]  ;;  %v474_v3 = vld [vmem:[#allocation6 + $0xae8] sm:$0xff] }
  0xf8   :  { %v469_v63 = vld [vmem:[#allocation6 + $0xac0] sm:$0xff]  ;;  %v298_v55 = vld [vmem:[#allocation6 + $0x568] sm:$0xff] }
  0xf9   :  { %1732 = vmatpush1.bf16.msra.mxu1 %v1731_v13  ;;  %v455_v13 = vld [vmem:[#allocation6 + $0xa50] sm:$0xff] }
  0xfa   :  { %1924 = vmatpush1.bf16.msra.mxu0 %v1923_v14  ;;  %1734 = vmatprep.subr.bf16.mxu1 %v1733_v15  ;;  %v268_v14 = vld [vmem:[#allocation6 + $0x478] sm:$0xff]  ;;  %v458_v15 = vld [vmem:[#allocation6 + $0xa68] sm:$0xff] }
  0xfb   :  { %1926 = vmatprep.subr.bf16.mxu0 %v1925_v19  ;;  %v265_v19 = vld [vmem:[#allocation6 + $0x460] sm:$0xff]  ;;  %v1945_v22 = vpack.c.bf16 %v460_v16, %v458_v15  ;;  %v478_v15 = vld [vmem:[#allocation6 + $0xb08] sm:$0xff]  ;;  %v480_v16 = vld [vmem:[#allocation6 + $0xb18] sm:$0xff] }
  0xfc   :  { %v1755_v31 = vpack.c.bf16 %v267_v20, %v265_v19  ;;  %v285_v19 = vld [vmem:[#allocation6 + $0x500] sm:$0xff]  ;;  %v287_v20 = vld [vmem:[#allocation6 + $0x510] sm:$0xff] }
  0xfd   :  { %1736 = vmatpush1.bf16.msra.mxu1 %v1735_v28  ;;  %v272_v28 = vld [vmem:[#allocation6 + $0x498] sm:$0xff] }
  0xfe   :  { %1928 = vmatpush1.bf16.msra.mxu0 %v1927_v29  ;;  %1738 = vmatprep.subr.bf16.mxu1 %v1737_v30  ;;  %v462_v29 = vld [vmem:[#allocation6 + $0xa88] sm:$0xff]  ;;  %v464_v30 = vld [vmem:[#allocation6 + $0xa98] sm:$0xff]  ;;  %v1757_v33 = vpack.c.bf16 %v272_v28, %v270_v25 }
  0xff   :  { %1930 = vmatprep.subr.bf16.mxu0 %v1929_v34  ;;  %v269_v34 = vld [vmem:[#allocation6 + $0x480] sm:$0xff]  ;;  %v1949_v37 = vpack.c.bf16 %v464_v30, %v462_v29  ;;  %v290_v25 = vld [vmem:[#allocation6 + $0x528] sm:$0xff]  ;;  %v292_v28 = vld [vmem:[#allocation6 + $0x538] sm:$0xff] }
 0x100   :  { %v482_v29 = vld [vmem:[#allocation6 + $0xb28] sm:$0xff]  ;;  %v484_v30 = vld [vmem:[#allocation6 + $0xb38] sm:$0xff] }
 0x101   :  { %1740 = vmatpush1.bf16.msra.mxu1 %v1739_v42  ;;  %v466_v42 = vld [vmem:[#allocation6 + $0xaa8] sm:$0xff] }
 0x102   :  { %1932 = vmatpush1.bf16.msra.mxu0 %v1931_v43  ;;  %1742 = vmatprep.subr.bf16.mxu1 %v1741_v44  ;;  %v468_v43 = vld [vmem:[#allocation6 + $0xab8] sm:$0xff]  ;;  %v1759_v44 = vpack.c.bf16 %v271_v35, %v269_v34  ;;  %v289_v34 = vld [vmem:[#allocation6 + $0x520] sm:$0xff]  ;;  %v291_v35 = vld [vmem:[#allocation6 + $0x530] sm:$0xff] }
 0x103   :  { %1934 = vmatprep.subr.bf16.mxu0 %v1933_v50  ;;  %v275_v50 = vld [vmem:[#allocation6 + $0x4b0] sm:$0xff]  ;;  %v1953_v52 = vpack.c.bf16 %v468_v43, %v466_v42  ;;  %v486_v42 = vld [vmem:[#allocation6 + $0xb48] sm:$0xff]  ;;  %v488_v43 = vld [vmem:[#allocation6 + $0xb58] sm:$0xff] }
 0x104   :  { %873 = vmatmul.mubr.f32.vlgmr.msra.gmra.mrb[0].mxu1 %v2659_v23  ;;  %v266_v23 = vld [vmem:[#allocation6 + $0x468] sm:$0xff] }
 0x105   :  { %1744 = vmatpush1.bf16.msra.mxu1 %v1743_v57  ;;  %1086 = vmatmul.mubr.f32.vlgmr.msra.gmra.mrb[0].mxu0 %v2669_v49  ;;  %v1943_v49 = vpack.c.bf16 %v455_v13, %v453_v10  ;;  %v1753_v18 = vpack.c.bf16 %v268_v14, %v266_v23  ;;  %v470_v57 = vld [vmem:[#allocation6 + $0xac8] sm:$0xff]  ;;  %v473_v10 = vld [vmem:[#allocation6 + $0xae0] sm:$0xff]  ;;  %v475_v13 = vld [vmem:[#allocation6 + $0xaf0] sm:$0xff] }
 0x106   :  { %1936 = vmatpush1.bf16.msra.mxu0 %v1935_v26  ;;  %1746 = vmatprep.subr.bf16.mxu1 %v1745_v58  ;;  %v472_v26 = vld [vmem:[#allocation6 + $0xad8] sm:$0xff]  ;;  %v1763_v58 = vpack.c.bf16 %v275_v50, %v273_v48  ;;  %v286_v23 = vld [vmem:[#allocation6 + $0x508] sm:$0xff]  ;;  %v293_v48 = vld [vmem:[#allocation6 + $0x540] sm:$0xff] }
 0x107   :  { %1938 = vmatprep.subr.bf16.mxu0 %v1937_v61  ;;  %943 = vmatprep.mubr.f32.mxu1 %v685_v1  ;;  %v279_v61 = vld [vmem:[#allocation6 + $0x4d0] sm:$0xff]  ;;  %v1957_v0 = vpack.c.bf16 %v472_v26, %v470_v57  ;;  %v282_v1 = vld [vmem:[#allocation6 + $0x4e8] sm:$0xff]  ;;  %v288_v14 = vld [vmem:[#allocation6 + $0x518] sm:$0xff] }
 0x108   :  { %1156 = vmatprep.mubr.f32.mxu0 %v703_v4  ;;  %v476_v4 = vld [vmem:[#allocation6 + $0xaf8] sm:$0xff]  ;;  %v295_v50 = vld [vmem:[#allocation6 + $0x550] sm:$0xff]  ;;  %v490_v57 = vld [vmem:[#allocation6 + $0xb68] sm:$0xff] }
 0x109   :  { %1748 = vmatpush1.bf16.msra.mxu1 %v1747_v5  ;;  %v1767_v5 = vpack.c.bf16 %v279_v61, %v277_v60  ;;  %v492_v26 = vld [vmem:[#allocation6 + $0xb78] sm:$0xff]  ;;  %v297_v60 = vld [vmem:[#allocation6 + $0x560] sm:$0xff]  ;;  %v299_v61 = vld [vmem:[#allocation6 + $0x570] sm:$0xff] }
 0x10a   :  { %1940 = vmatpush1.bf16.msra.mxu0 %v1939_v6  ;;  %1750 = vmatprep.subr.bf16.mxu1 %v1749_v7  ;;  %v1959_v6 = vpack.c.bf16 %v471_v27, %v469_v63  ;;  %v1769_v7 = vpack.c.bf16 %v284_v2, %v282_v1  ;;  %v489_v63 = vld [vmem:[#allocation6 + $0xb60] sm:$0xff]  ;;  %v491_v27 = vld [vmem:[#allocation6 + $0xb70] sm:$0xff]  ;;  %v302_v1 = vld [vmem:[#allocation6 + $0x588] sm:$0xff] }
 0x10b   :  { %1942 = vmatprep.subr.bf16.mxu0 %v1941_v11  ;;  %v1961_v11 = vpack.c.bf16 %v476_v4, %v474_v3  ;;  %v304_v2 = vld [vmem:[#allocation6 + $0x598] sm:$0xff]  ;;  %v494_v3 = vld [vmem:[#allocation6 + $0xb88] sm:$0xff] }
 0x10c   :  { %v496_v4 = vld [vmem:[#allocation6 + $0xb98] sm:$0xff] }
 0x10d   :  { %1752 = vmatpush1.bf16.msra.mxu1 %v1751_v17  ;;  %v1771_v17 = vpack.c.bf16 %v283_v9, %v281_v8  ;;  %v301_v8 = vld [vmem:[#allocation6 + $0x580] sm:$0xff]  ;;  %v303_v9 = vld [vmem:[#allocation6 + $0x590] sm:$0xff] }
 0x10e   :  { %1944 = vmatpush1.bf16.msra.mxu0 %v1943_v49  ;;  %1754 = vmatprep.subr.bf16.mxu1 %v1753_v18  ;;  %v1963_v49 = vpack.c.bf16 %v475_v13, %v473_v10  ;;  %v1773_v18 = vpack.c.bf16 %v288_v14, %v286_v23  ;;  %v493_v10 = vld [vmem:[#allocation6 + $0xb80] sm:$0xff]  ;;  %v495_v13 = vld [vmem:[#allocation6 + $0xb90] sm:$0xff]  ;;  %v306_v23 = vld [vmem:[#allocation6 + $0x5a8] sm:$0xff] }
 0x10f   :  { %1946 = vmatprep.subr.bf16.mxu0 %v1945_v22  ;;  %v1965_v22 = vpack.c.bf16 %v480_v16, %v478_v15  ;;  %v308_v14 = vld [vmem:[#allocation6 + $0x5b8] sm:$0xff]  ;;  %v498_v15 = vld [vmem:[#allocation6 + $0xba8] sm:$0xff] }
 0x110   :  { %v500_v16 = vld [vmem:[#allocation6 + $0xbb8] sm:$0xff] }
 0x111   :  { %1756 = vmatpush1.bf16.msra.mxu1 %v1755_v31  ;;  %v1775_v31 = vpack.c.bf16 %v287_v20, %v285_v19  ;;  %v305_v19 = vld [vmem:[#allocation6 + $0x5a0] sm:$0xff]  ;;  %v307_v20 = vld [vmem:[#allocation6 + $0x5b0] sm:$0xff] }
 0x112   :  { %1948 = vmatpush1.bf16.msra.mxu0 %v1947_v32  ;;  %1758 = vmatprep.subr.bf16.mxu1 %v1757_v33  ;;  %v1967_v32 = vpack.c.bf16 %v479_v24, %v477_v21  ;;  %v1777_v33 = vpack.c.bf16 %v292_v28, %v290_v25  ;;  %v497_v21 = vld [vmem:[#allocation6 + $0xba0] sm:$0xff]  ;;  %v499_v24 = vld [vmem:[#allocation6 + $0xbb0] sm:$0xff]  ;;  %v310_v25 = vld [vmem:[#allocation6 + $0x5c8] sm:$0xff] }
 0x113   :  { %1950 = vmatprep.subr.bf16.mxu0 %v1949_v37  ;;  %v1969_v37 = vpack.c.bf16 %v484_v30, %v482_v29  ;;  %v312_v28 = vld [vmem:[#allocation6 + $0x5d8] sm:$0xff]  ;;  %v502_v29 = vld [vmem:[#allocation6 + $0xbc8] sm:$0xff] }
 0x114   :  { %v504_v30 = vld [vmem:[#allocation6 + $0xbd8] sm:$0xff] }
 0x115   :  { %1760 = vmatpush1.bf16.msra.mxu1 %v1759_v44  ;;  %v1779_v44 = vpack.c.bf16 %v291_v35, %v289_v34  ;;  %v309_v34 = vld [vmem:[#allocation6 + $0x5c0] sm:$0xff]  ;;  %v311_v35 = vld [vmem:[#allocation6 + $0x5d0] sm:$0xff] }
 0x116   :  { %1952 = vmatpush1.bf16.msra.mxu0 %v1951_v45  ;;  %1762 = vmatprep.subr.bf16.mxu1 %v1761_v47  ;;  %v1971_v45 = vpack.c.bf16 %v483_v38, %v481_v36  ;;  %v1781_v47 = vpack.c.bf16 %v296_v41, %v294_v39  ;;  %v501_v36 = vld [vmem:[#allocation6 + $0xbc0] sm:$0xff]  ;;  %v503_v38 = vld [vmem:[#allocation6 + $0xbd0] sm:$0xff]  ;;  %v314_v39 = vld [vmem:[#allocation6 + $0x5e8] sm:$0xff] }
 0x117   :  { %1954 = vmatprep.subr.bf16.mxu0 %v1953_v52  ;;  %v1973_v52 = vpack.c.bf16 %v488_v43, %v486_v42  ;;  %v316_v41 = vld [vmem:[#allocation6 + $0x5f8] sm:$0xff]  ;;  %v506_v42 = vld [vmem:[#allocation6 + $0xbe8] sm:$0xff] }
 0x118   :  { %v508_v43 = vld [vmem:[#allocation6 + $0xbf8] sm:$0xff] }
 0x119   :  { %1764 = vmatpush1.bf16.msra.mxu1 %v1763_v58  ;;  %v1783_v58 = vpack.c.bf16 %v295_v50, %v293_v48  ;;  %v313_v48 = vld [vmem:[#allocation6 + $0x5e0] sm:$0xff]  ;;  %v315_v50 = vld [vmem:[#allocation6 + $0x5f0] sm:$0xff] }
 0x11a   :  { %1956 = vmatpush1.bf16.msra.mxu0 %v1955_v59  ;;  %1766 = vmatprep.subr.bf16.mxu1 %v1765_v40  ;;  %v1975_v59 = vpack.c.bf16 %v487_v53, %v485_v51  ;;  %v1785_v40 = vpack.c.bf16 %v300_v46, %v298_v55  ;;  %v1993_v51 = vpack.c.bf16 %v508_v43, %v506_v42  ;;  %v507_v53 = vld [vmem:[#allocation6 + $0xbf0] sm:$0xff]  ;;  %v2688_v55 = vld [vmem:[#allocation3 + $0x18] sm:$0xff]  ;;  %v510_v46 = vld [vmem:[#allocation6 + $0xc08] sm:$0xff] }
 0x11b   :  { %1958 = vmatprep.subr.bf16.mxu0 %v1957_v0  ;;  %v1977_v0 = vpack.c.bf16 %v492_v26, %v490_v57  ;;  %v512_v57 = vld [vmem:[#allocation6 + $0xc18] sm:$0xff]  ;;  %v1803_v26 = vpack.c.bf16 %v315_v50, %v313_v48  ;;  %v542_v42 = vld [vmem:[#allocation6 + $0xd08] sm:$0xff]  ;;  %v543_v48 = vld [vmem:[#allocation6 + $0xd10] sm:$0xff] }
 0x11c   :  { %v544_v43 = vld [vmem:[#allocation6 + $0xd18] sm:$0xff]  ;;  %v546_v50 = vld [vmem:[#allocation6 + $0xd28] sm:$0xff] }
 0x11d   :  { %1768 = vmatpush1.bf16.msra.mxu1 %v1767_v5  ;;  %v1787_v5 = vpack.c.bf16 %v299_v61, %v297_v60  ;;  %v509_v60 = vld [vmem:[#allocation6 + $0xc00] sm:$0xff]  ;;  %v511_v61 = vld [vmem:[#allocation6 + $0xc10] sm:$0xff] }
 0x11e   :  { %1960 = vmatpush1.bf16.msra.mxu0 %v1959_v6  ;;  %1770 = vmatprep.subr.bf16.mxu1 %v1769_v7  ;;  %v1979_v6 = vpack.c.bf16 %v491_v27, %v489_v63  ;;  %v1789_v7 = vpack.c.bf16 %v304_v2, %v302_v1  ;;  %v514_v63 = vld [vmem:[#allocation6 + $0xc28] sm:$0xff]  ;;  %v1999_v27 = vpack.c.bf16 %v511_v61, %v509_v60  ;;  %v549_v61 = vld [vmem:[#allocation6 + $0xd40] sm:$0xff] }
 0x11f   :  { %1962 = vmatprep.subr.bf16.mxu0 %v1961_v11  ;;  %v1981_v11 = vpack.c.bf16 %v496_v4, %v494_v3  ;;  %v513_v3 = vld [vmem:[#allocation6 + $0xc20] sm:$0xff]  ;;  %v515_v4 = vld [vmem:[#allocation6 + $0xc30] sm:$0xff] }
 0x121   :  { %1772 = vmatpush1.bf16.msra.mxu1 %v1771_v17  ;;  %v1791_v17 = vpack.c.bf16 %v303_v9, %v301_v8  ;;  %v517_v9 = vld [vmem:[#allocation6 + $0xc40] sm:$0xff] }
 0x122   :  { %1964 = vmatpush1.bf16.msra.mxu0 %v1963_v49  ;;  %1774 = vmatprep.subr.bf16.mxu1 %v1773_v18  ;;  %v1983_v49 = vpack.c.bf16 %v495_v13, %v493_v10  ;;  %v1793_v18 = vpack.c.bf16 %v308_v14, %v306_v23  ;;  %v519_v10 = vld [vmem:[#allocation6 + $0xc50] sm:$0xff]  ;;  %v524_v13 = vld [vmem:[#allocation6 + $0xc78] sm:$0xff] }
 0x123   :  { %1966 = vmatprep.subr.bf16.mxu0 %v1965_v22  ;;  %v1985_v22 = vpack.c.bf16 %v500_v16, %v498_v15  ;;  %v2007_v23 = vpack.c.bf16 %v519_v10, %v517_v9  ;;  %v521_v15 = vld [vmem:[#allocation6 + $0xc60] sm:$0xff]  ;;  %v523_v16 = vld [vmem:[#allocation6 + $0xc70] sm:$0xff] }
 0x124   :  { %v557_v9 = vld [vmem:[#allocation6 + $0xd80] sm:$0xff]  ;;  %v559_v10 = vld [vmem:[#allocation6 + $0xd90] sm:$0xff] }
 0x125   :  { %1776 = vmatpush1.bf16.msra.mxu1 %v1775_v31  ;;  %v1795_v31 = vpack.c.bf16 %v307_v20, %v305_v19  ;;  %v527_v19 = vld [vmem:[#allocation6 + $0xc90] sm:$0xff]  ;;  %v530_v20 = vld [vmem:[#allocation6 + $0xca8] sm:$0xff] }
 0x126   :  { %1968 = vmatpush1.bf16.msra.mxu0 %v1967_v32  ;;  %1778 = vmatprep.subr.bf16.mxu1 %v1777_v33  ;;  %v1987_v32 = vpack.c.bf16 %v499_v24, %v497_v21  ;;  %v1797_v33 = vpack.c.bf16 %v312_v28, %v310_v25  ;;  %v532_v21 = vld [vmem:[#allocation6 + $0xcb8] sm:$0xff]  ;;  %v529_v25 = vld [vmem:[#allocation6 + $0xca0] sm:$0xff]  ;;  %v531_v28 = vld [vmem:[#allocation6 + $0xcb0] sm:$0xff] }
 0x127   :  { %1970 = vmatprep.subr.bf16.mxu0 %v1969_v37  ;;  %v1989_v37 = vpack.c.bf16 %v504_v30, %v502_v29  ;;  %v2017_v24 = vpack.c.bf16 %v532_v21, %v530_v20  ;;  %v534_v29 = vld [vmem:[#allocation6 + $0xcc8] sm:$0xff]  ;;  %v536_v30 = vld [vmem:[#allocation6 + $0xcd8] sm:$0xff] }
 0x128   :  { %v570_v20 = vld [vmem:[#allocation6 + $0xde8] sm:$0xff]  ;;  %v572_v21 = vld [vmem:[#allocation6 + $0xdf8] sm:$0xff] }
 0x129   :  { %1780 = vmatpush1.bf16.msra.mxu1 %v1779_v44  ;;  %v1799_v44 = vpack.c.bf16 %v311_v35, %v309_v34  ;;  %v535_v34 = vld [vmem:[#allocation6 + $0xcd0] sm:$0xff]  ;;  %v538_v35 = vld [vmem:[#allocation6 + $0xce8] sm:$0xff] }
 0x12a   :  { %1972 = vmatpush1.bf16.msra.mxu0 %v1971_v45  ;;  %1782 = vmatprep.subr.bf16.mxu1 %v1781_v47  ;;  %v1991_v45 = vpack.c.bf16 %v503_v38, %v501_v36  ;;  %v1801_v47 = vpack.c.bf16 %v316_v41, %v314_v39  ;;  %v540_v36 = vld [vmem:[#allocation6 + $0xcf8] sm:$0xff]  ;;  %v537_v39 = vld [vmem:[#allocation6 + $0xce0] sm:$0xff]  ;;  %v539_v41 = vld [vmem:[#allocation6 + $0xcf0] sm:$0xff] }
 0x12b   :  { %1974 = vmatprep.subr.bf16.mxu0 %v1973_v52  ;;  %v505_v52 = vld [vmem:[#allocation6 + $0xbe0] sm:$0xff]  ;;  %v2025_v38 = vpack.c.bf16 %v540_v36, %v538_v35  ;;  %v575_v36 = vld [vmem:[#allocation6 + $0xe10] sm:$0xff] }
 0x12c   :  { %v573_v35 = vld [vmem:[#allocation6 + $0xe00] sm:$0xff] }
 0x12d   :  { %1784 = vmatpush1.bf16.msra.mxu1 %v1783_v58  ;;  %v1995_v58 = vpack.c.bf16 %v507_v53, %v505_v52 }
 0x12e   :  { %1976 = vmatpush1.bf16.msra.mxu0 %v1975_v59  ;;  %1786 = vmatprep.subr.bf16.mxu1 %v1785_v40  ;;  %v2692_v59 = vrot.slane %v2688_v55, %v2637_v12  ;;  %v1997_v40 = vpack.c.bf16 %v512_v57, %v510_v46  ;;  %v545_v46 = vld [vmem:[#allocation6 + $0xd20] sm:$0xff]  ;;  %v547_v57 = vld [vmem:[#allocation6 + $0xd30] sm:$0xff] }
 0x12f   :  { %1978 = vmatprep.subr.bf16.mxu0 %v1977_v0  ;;  %v516_v0 = vld [vmem:[#allocation6 + $0xc38] sm:$0xff] }
 0x130   :  { %v719_v1 = vcombine.high %v2692_v59, %v2692_v59  ;;  %v2001_v2 = vpack.c.bf16 %v516_v0, %v514_v63  ;;  %v551_v63 = vld [vmem:[#allocation6 + $0xd50] sm:$0xff]  ;;  %v554_v0 = vld [vmem:[#allocation6 + $0xd68] sm:$0xff] }
 0x131   :  { %1788 = vmatpush1.bf16.msra.mxu1 %v1787_v5  ;;  %v518_v5 = vld [vmem:[#allocation6 + $0xc48] sm:$0xff] }
 0x132   :  { %1980 = vmatpush1.bf16.msra.mxu0 %v1979_v6  ;;  %1790 = vmatprep.subr.bf16.mxu1 %v1789_v7  ;;  %v520_v6 = vld [vmem:[#allocation6 + $0xc58] sm:$0xff]  ;;  %v2003_v7 = vpack.c.bf16 %v515_v4, %v513_v3  ;;  %v553_v3 = vld [vmem:[#allocation6 + $0xd60] sm:$0xff]  ;;  %v555_v4 = vld [vmem:[#allocation6 + $0xd70] sm:$0xff] }
 0x133   :  { %1982 = vmatprep.subr.bf16.mxu0 %v1981_v11  ;;  %v2005_v8 = vpack.c.bf16 %v520_v6, %v518_v5  ;;  %v522_v11 = vld [vmem:[#allocation6 + $0xc68] sm:$0xff]  ;;  %v560_v6 = vld [vmem:[#allocation6 + $0xd98] sm:$0xff] }
 0x134   :  { %v2009_v14 = vpack.c.bf16 %v524_v13, %v522_v11  ;;  %v558_v5 = vld [vmem:[#allocation6 + $0xd88] sm:$0xff]  ;;  %v564_v13 = vld [vmem:[#allocation6 + $0xdb8] sm:$0xff] }
 0x135   :  { %1792 = vmatpush1.bf16.msra.mxu1 %v1791_v17  ;;  %v528_v17 = vld [vmem:[#allocation6 + $0xc98] sm:$0xff]  ;;  %v562_v11 = vld [vmem:[#allocation6 + $0xda8] sm:$0xff] }
 0x136   :  { %1984 = vmatpush1.bf16.msra.mxu0 %v1983_v49  ;;  %1794 = vmatprep.subr.bf16.mxu1 %v1793_v18  ;;  %v2011_v49 = vpack.c.bf16 %v523_v16, %v521_v15  ;;  %v525_v18 = vld [vmem:[#allocation6 + $0xc80] sm:$0xff]  ;;  %v563_v16 = vld [vmem:[#allocation6 + $0xdb0] sm:$0xff] }
 0x137   :  { %1986 = vmatprep.subr.bf16.mxu0 %v1985_v22  ;;  %v2015_v22 = vpack.c.bf16 %v527_v19, %v525_v18  ;;  %v561_v15 = vld [vmem:[#allocation6 + $0xda0] sm:$0xff]  ;;  %v567_v19 = vld [vmem:[#allocation6 + $0xdd0] sm:$0xff] }
 0x138   :  { %v565_v18 = vld [vmem:[#allocation6 + $0xdc0] sm:$0xff] }
 0x139   :  { %1796 = vmatpush1.bf16.msra.mxu1 %v1795_v31  ;;  %v2019_v31 = vpack.c.bf16 %v531_v28, %v529_v25  ;;  %v2057_v25 = vpack.c.bf16 %v572_v21, %v570_v20  ;;  %v569_v28 = vld [vmem:[#allocation6 + $0xde0] sm:$0xff] }
 0x13a   :  { %1988 = vmatpush1.bf16.msra.mxu0 %v1987_v32  ;;  %1798 = vmatprep.subr.bf16.mxu1 %v1797_v33  ;;  %v2021_v32 = vpack.c.bf16 %v536_v30, %v534_v29  ;;  %v533_v33 = vld [vmem:[#allocation6 + $0xcc0] sm:$0xff]  ;;  %v571_v29 = vld [vmem:[#allocation6 + $0xdf0] sm:$0xff]  ;;  %v574_v30 = vld [vmem:[#allocation6 + $0xe08] sm:$0xff] }
 0x13b   :  { %1990 = vmatprep.subr.bf16.mxu0 %v1989_v37  ;;  %v2023_v37 = vpack.c.bf16 %v535_v34, %v533_v33  ;;  %v1314_v20 = vld [vmem:[#allocation9 + $0x38] sm:$0xff] }
 0x13d   :  { %1800 = vmatpush1.bf16.msra.mxu1 %v1799_v44  ;;  %v2027_v44 = vpack.c.bf16 %v539_v41, %v537_v39  ;;  %v2063_v39 = vpack.c.bf16 %v575_v36, %v573_v35  ;;  %v605_v36 = vld [vmem:[#allocation6 + $0xf00] sm:$0xff] }
 0x13e   :  { %1992 = vmatpush1.bf16.msra.mxu0 %v1991_v45  ;;  %1802 = vmatprep.subr.bf16.mxu1 %v1801_v47  ;;  %v2029_v45 = vpack.c.bf16 %v544_v43, %v542_v42  ;;  %v541_v47 = vld [vmem:[#allocation6 + $0xd00] sm:$0xff]  ;;  %v579_v43 = vld [vmem:[#allocation6 + $0xe30] sm:$0xff] }
 0x13f   :  { %1994 = vmatprep.subr.bf16.mxu0 %v1993_v51  ;;  %v548_v51 = vld [vmem:[#allocation6 + $0xd38] sm:$0xff]  ;;  %v2031_v52 = vpack.c.bf16 %v543_v48, %v541_v47  ;;  %v577_v42 = vld [vmem:[#allocation6 + $0xe20] sm:$0xff] }
 0x140   :  { %v2033_v53 = vpack.c.bf16 %v548_v51, %v546_v50  ;;  %v2067_v47 = vpack.c.bf16 %v579_v43, %v577_v42  ;;  %v581_v50 = vld [vmem:[#allocation6 + $0xe40] sm:$0xff]  ;;  %v583_v51 = vld [vmem:[#allocation6 + $0xe50] sm:$0xff] }
 0x141   :  { %1804 = vmatpush1.bf16.msra.mxu1 %v1803_v26  ;;  %v550_v26 = vld [vmem:[#allocation6 + $0xd48] sm:$0xff]  ;;  %v1322_v43 = vld [vmem:[#allocation9 + $0x78] sm:$0xff] }
 0x142   :  { %1996 = vmatpush1.bf16.msra.mxu0 %v1995_v58  ;;  %v552_v58 = vld [vmem:[#allocation6 + $0xd58] sm:$0xff]  ;;  %v1320_v42 = vld [vmem:[#allocation9 + $0x68] sm:$0xff] }
 0x143   :  { %1998 = vmatprep.subr.bf16.mxu0 %v1997_v40  ;;  %v2035_v40 = vpack.c.bf16 %v547_v57, %v545_v46  ;;  %v2037_v60 = vpack.c.bf16 %v552_v58, %v550_v26  ;;  %v2071_v46 = vpack.c.bf16 %v583_v51, %v581_v50  ;;  %v585_v26 = vld [vmem:[#allocation6 + $0xe60] sm:$0xff]  ;;  %v587_v58 = vld [vmem:[#allocation6 + $0xe70] sm:$0xff]  ;;  %v2137_v51 = vpack.c.bf16 %v1322_v43, %v1320_v42  ;;  %v630_v43 = vld [vmem:[#allocation6 + $0xfc8] sm:$0xff] }
 0x144   :  { %944 = vmatmul.mubr.f32.vlgmr.msra.gmra.mrb[0].mxu1 %v2677_v54  ;;  %v526_v54 = vld [vmem:[#allocation6 + $0xc88] sm:$0xff]  ;;  %v609_v50 = vld [vmem:[#allocation6 + $0xf20] sm:$0xff] }
 0x145   :  { %1157 = vmatmul.mubr.f32.vlgmr.msra.gmra.mrb[0].mxu0 %v2680_v56  ;;  %v2013_v56 = vpack.c.bf16 %v528_v17, %v526_v54  ;;  %v566_v54 = vld [vmem:[#allocation6 + $0xdc8] sm:$0xff]  ;;  %v568_v17 = vld [vmem:[#allocation6 + $0xdd8] sm:$0xff] }
 0x146   :  { %2000 = vmatpush1.bf16.msra.mxu0 %v1999_v27  ;;  %1227 = vmatprep.mubr.f32.mxu0 %v719_v1  ;;  %v556_v27 = vld [vmem:[#allocation6 + $0xd78] sm:$0xff]  ;;  %v2039_v1 = vpack.c.bf16 %v551_v63, %v549_v61  ;;  %v2075_v61 = vpack.c.bf16 %v587_v58, %v585_v26  ;;  %v589_v63 = vld [vmem:[#allocation6 + $0xe80] sm:$0xff]  ;;  %v1324_v26 = vld [vmem:[#allocation9 + $0x88] sm:$0xff] }
 0x147   :  { %2002 = vmatprep.subr.bf16.mxu0 %v2001_v2  ;;  %v2041_v2 = vpack.c.bf16 %v556_v27, %v554_v0  ;;  %v591_v0 = vld [vmem:[#allocation6 + $0xe90] sm:$0xff]  ;;  %v594_v27 = vld [vmem:[#allocation6 + $0xea8] sm:$0xff]  ;;  %v1326_v58 = vld [vmem:[#allocation9 + $0x98] sm:$0xff] }
 0x148   :  { %v1342_v42 = vld [vmem:[#allocation9 + $0x118] sm:$0xff] }
 0x14a   :  { %2004 = vmatpush1.bf16.msra.mxu0 %v2003_v7  ;;  %v2043_v7 = vpack.c.bf16 %v555_v4, %v553_v3  ;;  %v593_v4 = vld [vmem:[#allocation6 + $0xea0] sm:$0xff] }
 0x14b   :  { %2006 = vmatprep.subr.bf16.mxu0 %v2005_v8  ;;  %v2045_v8 = vpack.c.bf16 %v560_v6, %v558_v5  ;;  %v595_v5 = vld [vmem:[#allocation6 + $0xeb0] sm:$0xff]  ;;  %v598_v6 = vld [vmem:[#allocation6 + $0xec8] sm:$0xff] }
 0x14e   :  { %2008 = vmatpush1.bf16.msra.mxu0 %v2007_v23  ;;  %v2047_v23 = vpack.c.bf16 %v559_v10, %v557_v9  ;;  %v597_v10 = vld [vmem:[#allocation6 + $0xec0] sm:$0xff] }
 0x14f   :  { %2010 = vmatprep.subr.bf16.mxu0 %v2009_v14  ;;  %v2049_v14 = vpack.c.bf16 %v564_v13, %v562_v11  ;;  %v599_v11 = vld [vmem:[#allocation6 + $0xed0] sm:$0xff]  ;;  %v602_v13 = vld [vmem:[#allocation6 + $0xee8] sm:$0xff] }
 0x152   :  { %2012 = vmatpush1.bf16.msra.mxu0 %v2011_v49  ;;  %v2051_v49 = vpack.c.bf16 %v563_v16, %v561_v15  ;;  %v603_v15 = vld [vmem:[#allocation6 + $0xef0] sm:$0xff] }
 0x153   :  { %2014 = vmatprep.subr.bf16.mxu0 %v2013_v56  ;;  %v2053_v56 = vpack.c.bf16 %v568_v17, %v566_v54  ;;  %v1308_v16 = vld [vmem:[#allocation9 + $0x8] sm:$0xff]  ;;  %v1310_v54 = vld [vmem:[#allocation9 + $0x18] sm:$0xff]  ;;  %v1307_v17 = vld [vmem:[#allocation9] sm:$0xff] }
 0x156   :  { %2016 = vmatpush1.bf16.msra.mxu0 %v2015_v22  ;;  %v2055_v22 = vpack.c.bf16 %v567_v19, %v565_v18  ;;  %v1309_v18 = vld [vmem:[#allocation9 + $0x10] sm:$0xff]  ;;  %v1312_v19 = vld [vmem:[#allocation9 + $0x28] sm:$0xff] }
 0x157   :  { %2018 = vmatprep.subr.bf16.mxu0 %v2017_v24  ;;  %v704_v24 = vcombine.high %v2688_v55, %v2688_v55 }
 0x159   :  { %v2701_v33 = vrot.slane %v704_v24, %v2637_v12  ;;  %v2129_v24 = vpack.c.bf16 %v1314_v20, %v1312_v19  ;;  %v621_v19 = vld [vmem:[#allocation6 + $0xf80] sm:$0xff] }
 0x15a   :  { %2020 = vmatpush1.bf16.msra.mxu0 %v2019_v31  ;;  %v576_v31 = vld [vmem:[#allocation6 + $0xe18] sm:$0xff] }
 0x15b   :  { %2022 = vmatprep.subr.bf16.mxu0 %v2021_v32  ;;  %v2059_v32 = vpack.c.bf16 %v571_v29, %v569_v28  ;;  %v2061_v34 = vpack.c.bf16 %v576_v31, %v574_v30  ;;  %v720_v55 = vcombine.high %v2701_v33, %v2701_v33  ;;  %v1313_v28 = vld [vmem:[#allocation9 + $0x30] sm:$0xff]  ;;  %v1316_v29 = vld [vmem:[#allocation9 + $0x48] sm:$0xff] }
 0x15c   :  { %v606_v30 = vld [vmem:[#allocation6 + $0xf08] sm:$0xff]  ;;  %v608_v31 = vld [vmem:[#allocation6 + $0xf18] sm:$0xff] }
 0x15e   :  { %2024 = vmatpush1.bf16.msra.mxu0 %v2023_v37  ;;  %v578_v37 = vld [vmem:[#allocation6 + $0xe28] sm:$0xff] }
 0x15f   :  { %2026 = vmatprep.subr.bf16.mxu0 %v2025_v38  ;;  %v580_v38 = vld [vmem:[#allocation6 + $0xe38] sm:$0xff] }
 0x160   :  { %v2065_v41 = vpack.c.bf16 %v580_v38, %v578_v37  ;;  %v1315_v38 = vld [vmem:[#allocation9 + $0x40] sm:$0xff] }
 0x162   :  { %2028 = vmatpush1.bf16.msra.mxu0 %v2027_v44  ;;  %v582_v44 = vld [vmem:[#allocation6 + $0xe48] sm:$0xff] }
 0x163   :  { %2030 = vmatprep.subr.bf16.mxu0 %v2029_v45  ;;  %v584_v45 = vld [vmem:[#allocation6 + $0xe58] sm:$0xff] }
 0x164   :  { %v2069_v48 = vpack.c.bf16 %v584_v45, %v582_v44  ;;  %v610_v44 = vld [vmem:[#allocation6 + $0xf28] sm:$0xff]  ;;  %v612_v45 = vld [vmem:[#allocation6 + $0xf38] sm:$0xff] }
 0x166   :  { %2032 = vmatpush1.bf16.msra.mxu0 %v2031_v52  ;;  %v586_v52 = vld [vmem:[#allocation6 + $0xe68] sm:$0xff] }
 0x167   :  { %2034 = vmatprep.subr.bf16.mxu0 %v2033_v53  ;;  %v588_v53 = vld [vmem:[#allocation6 + $0xe78] sm:$0xff] }
 0x168   :  { %v2073_v57 = vpack.c.bf16 %v588_v53, %v586_v52  ;;  %v1319_v52 = vld [vmem:[#allocation9 + $0x60] sm:$0xff]  ;;  %v1321_v53 = vld [vmem:[#allocation9 + $0x70] sm:$0xff] }
 0x16a   :  { %2036 = vmatpush1.bf16.msra.mxu0 %v2035_v40  ;;  %v590_v40 = vld [vmem:[#allocation6 + $0xe88] sm:$0xff] }
 0x16b   :  { %2038 = vmatprep.subr.bf16.mxu0 %v2037_v60  ;;  %v592_v60 = vld [vmem:[#allocation6 + $0xe98] sm:$0xff] }
 0x16e   :  { %2040 = vmatpush1.bf16.msra.mxu0 %v2039_v1  ;;  %v596_v1 = vld [vmem:[#allocation6 + $0xeb8] sm:$0xff] }
 0x16f   :  { %2042 = vmatprep.subr.bf16.mxu0 %v2041_v2  ;;  %v2079_v2 = vpack.c.bf16 %v591_v0, %v589_v63  ;;  %v2081_v3 = vpack.c.bf16 %v596_v1, %v594_v27  ;;  %v613_v63 = vld [vmem:[#allocation6 + $0xf40] sm:$0xff]  ;;  %v2141_v0 = vpack.c.bf16 %v1326_v58, %v1324_v26  ;;  %v1325_v1 = vld [vmem:[#allocation9 + $0x90] sm:$0xff]  ;;  %v634_v58 = vld [vmem:[#allocation6 + $0xfe8] sm:$0xff] }
 0x170   :  { %v1323_v27 = vld [vmem:[#allocation9 + $0x80] sm:$0xff]  ;;  %v1346_v26 = vld [vmem:[#allocation9 + $0x138] sm:$0xff] }
 0x172   :  { %2044 = vmatpush1.bf16.msra.mxu0 %v2043_v7  ;;  %v600_v7 = vld [vmem:[#allocation6 + $0xed8] sm:$0xff] }
 0x173   :  { %2046 = vmatprep.subr.bf16.mxu0 %v2045_v8  ;;  %v2083_v8 = vpack.c.bf16 %v595_v5, %v593_v4  ;;  %v2085_v9 = vpack.c.bf16 %v600_v7, %v598_v6  ;;  %v1328_v4 = vld [vmem:[#allocation9 + $0xa8] sm:$0xff]  ;;  %v1330_v5 = vld [vmem:[#allocation9 + $0xb8] sm:$0xff] }
 0x174   :  { %v618_v6 = vld [vmem:[#allocation6 + $0xf68] sm:$0xff]  ;;  %v620_v7 = vld [vmem:[#allocation6 + $0xf78] sm:$0xff] }
 0x176   :  { %2048 = vmatpush1.bf16.msra.mxu0 %v2047_v23  ;;  %v604_v23 = vld [vmem:[#allocation6 + $0xef8] sm:$0xff] }
 0x177   :  { %2050 = vmatprep.subr.bf16.mxu0 %v2049_v14  ;;  %v601_v14 = vld [vmem:[#allocation6 + $0xee0] sm:$0xff]  ;;  %v2089_v21 = vpack.c.bf16 %v604_v23, %v602_v13  ;;  %v1329_v23 = vld [vmem:[#allocation9 + $0xb0] sm:$0xff] }
 0x178   :  { %v2091_v35 = vpack.c.bf16 %v603_v15, %v601_v14  ;;  %v1327_v13 = vld [vmem:[#allocation9 + $0xa0] sm:$0xff]  ;;  %v2105_v14 = vpack.c.bf16 %v620_v7, %v618_v6  ;;  %v619_v15 = vld [vmem:[#allocation6 + $0xf70] sm:$0xff] }
 0x17a   :  { %2052 = vmatpush1.bf16.msra.mxu0 %v2051_v49  ;;  %v2087_v49 = vpack.c.bf16 %v599_v11, %v597_v10  ;;  %v617_v10 = vld [vmem:[#allocation6 + $0xf60] sm:$0xff]  ;;  %v2145_v11 = vpack.c.bf16 %v1330_v5, %v1328_v4 }
 0x17b   :  { %2054 = vmatprep.subr.bf16.mxu0 %v2053_v56  ;;  %v2125_v56 = vpack.c.bf16 %v1310_v54, %v1308_v16  ;;  %v1332_v16 = vld [vmem:[#allocation9 + $0xc8] sm:$0xff]  ;;  %v1334_v54 = vld [vmem:[#allocation9 + $0xd8] sm:$0xff] }
 0x17c   :  { %v2149_v20 = vpack.c.bf16 %v1334_v54, %v1332_v16  ;;  %v1350_v4 = vld [vmem:[#allocation9 + $0x158] sm:$0xff]  ;;  %v1356_v16 = vld [vmem:[#allocation9 + $0x188] sm:$0xff] }
 0x17d   :  { %2126 = vmatprep.subr.bf16.mxu1 %v2125_v56  ;;  %v2147_v56 = vpack.c.bf16 %v1329_v23, %v1327_v13  ;;  %v1358_v54 = vld [vmem:[#allocation9 + $0x198] sm:$0xff] }
 0x17e   :  { %2056 = vmatpush1.bf16.msra.mxu0 %v2055_v22  ;;  %v2127_v22 = vpack.c.bf16 %v1309_v18, %v1307_v17  ;;  %v622_v17 = vld [vmem:[#allocation6 + $0xf88] sm:$0xff]  ;;  %v2107_v18 = vpack.c.bf16 %v619_v15, %v617_v10  ;;  %v1353_v15 = vld [vmem:[#allocation9 + $0x170] sm:$0xff] }
 0x17f   :  { %2058 = vmatprep.subr.bf16.mxu0 %v2057_v25  ;;  %v1311_v25 = vld [vmem:[#allocation9 + $0x20] sm:$0xff]  ;;  %v1352_v10 = vld [vmem:[#allocation9 + $0x168] sm:$0xff] }
 0x180   :  { %2128 = vmatpush1.bf16.msra.mxu1 %v2127_v22  ;;  %v1333_v22 = vld [vmem:[#allocation9 + $0xd0] sm:$0xff] }
 0x181   :  { %2130 = vmatprep.subr.bf16.mxu1 %v2129_v24 }
 0x182   :  { %2060 = vmatpush1.bf16.msra.mxu0 %v2059_v32  ;;  %v1318_v32 = vld [vmem:[#allocation9 + $0x58] sm:$0xff] }
 0x183   :  { %2062 = vmatprep.subr.bf16.mxu0 %v2061_v34  ;;  %v2131_v34 = vpack.c.bf16 %v1313_v28, %v1311_v25  ;;  %v2133_v37 = vpack.c.bf16 %v1318_v32, %v1316_v29  ;;  %v623_v25 = vld [vmem:[#allocation6 + $0xf90] sm:$0xff]  ;;  %v1338_v29 = vld [vmem:[#allocation9 + $0xf8] sm:$0xff] }
 0x184   :  { %v1336_v28 = vld [vmem:[#allocation9 + $0xe8] sm:$0xff] }
 0x185   :  { %1228 = vmatmul.mubr.f32.vlgmr.msra.gmra.mrb[0].mxu0 %v2692_v59  ;;  %v2077_v59 = vpack.c.bf16 %v592_v60, %v590_v40  ;;  %2132 = vmatpush1.bf16.msra.mxu1 %v2131_v34  ;;  %v614_v40 = vld [vmem:[#allocation6 + $0xf48] sm:$0xff]  ;;  %v616_v60 = vld [vmem:[#allocation6 + $0xf58] sm:$0xff]  ;;  %v2111_v34 = vpack.c.bf16 %v623_v25, %v621_v19 }
 0x186   :  { %2064 = vmatpush1.bf16.msra.mxu0 %v2063_v39  ;;  %1298 = vmatprep.mubr.f32.mxu0 %v720_v55  ;;  %v1317_v39 = vld [vmem:[#allocation9 + $0x50] sm:$0xff]  ;;  %v2093_v55 = vpack.c.bf16 %v608_v31, %v606_v30  ;;  %v626_v30 = vld [vmem:[#allocation6 + $0xfa8] sm:$0xff] }
 0x187   :  { %2066 = vmatprep.subr.bf16.mxu0 %v2065_v41  ;;  %v607_v41 = vld [vmem:[#allocation6 + $0xf10] sm:$0xff]  ;;  %2134 = vmatprep.subr.bf16.mxu1 %v2133_v37  ;;  %v628_v31 = vld [vmem:[#allocation6 + $0xfb8] sm:$0xff]  ;;  %v1335_v37 = vld [vmem:[#allocation9 + $0xe0] sm:$0xff] }
 0x188   :  { %v1360_v19 = vld [vmem:[#allocation9 + $0x1a8] sm:$0xff]  ;;  %v1361_v25 = vld [vmem:[#allocation9 + $0x1b0] sm:$0xff] }
 0x18a   :  { %2068 = vmatpush1.bf16.msra.mxu0 %v2067_v47  ;;  %v2135_v47 = vpack.c.bf16 %v1317_v39, %v1315_v38  ;;  %v1337_v38 = vld [vmem:[#allocation9 + $0xf0] sm:$0xff]  ;;  %v2113_v39 = vpack.c.bf16 %v628_v31, %v626_v30  ;;  %v1363_v31 = vld [vmem:[#allocation9 + $0x1c0] sm:$0xff] }
 0x18b   :  { %2070 = vmatprep.subr.bf16.mxu0 %v2069_v48  ;;  %v2095_v48 = vpack.c.bf16 %v607_v41, %v605_v36  ;;  %v2153_v36 = vpack.c.bf16 %v1338_v29, %v1336_v28  ;;  %v1340_v41 = vld [vmem:[#allocation9 + $0x108] sm:$0xff]  ;;  %v1366_v29 = vld [vmem:[#allocation9 + $0x1d8] sm:$0xff] }
 0x18c   :  { %2136 = vmatpush1.bf16.msra.mxu1 %v2135_v47  ;;  %v1364_v28 = vld [vmem:[#allocation9 + $0x1c8] sm:$0xff] }
 0x18d   :  { %2138 = vmatprep.subr.bf16.mxu1 %v2137_v51  ;;  %v1339_v51 = vld [vmem:[#allocation9 + $0x100] sm:$0xff] }
 0x18e   :  { %2072 = vmatpush1.bf16.msra.mxu0 %v2071_v46  ;;  %v2097_v46 = vpack.c.bf16 %v612_v45, %v610_v44  ;;  %v632_v44 = vld [vmem:[#allocation6 + $0xfd8] sm:$0xff]  ;;  %v2155_v45 = vpack.c.bf16 %v1337_v38, %v1335_v37  ;;  %v1368_v37 = vld [vmem:[#allocation9 + $0x1e8] sm:$0xff] }
 0x18f   :  { %2074 = vmatprep.subr.bf16.mxu0 %v2073_v57  ;;  %v611_v57 = vld [vmem:[#allocation6 + $0xf30] sm:$0xff]  ;;  %v1370_v38 = vld [vmem:[#allocation9 + $0x1f8] sm:$0xff] }
 0x192   :  { %2076 = vmatpush1.bf16.msra.mxu0 %v2075_v61  ;;  %v2139_v61 = vpack.c.bf16 %v1321_v53, %v1319_v52  ;;  %v1341_v52 = vld [vmem:[#allocation9 + $0x110] sm:$0xff]  ;;  %v2117_v53 = vpack.c.bf16 %v632_v44, %v630_v43  ;;  %v641_v43 = vsub.s32 0, %v2634_v62  ;;  %v637_v44 = vld [vmem:[#allocation8] sm:$0x3] }
 0x193   :  { %2078 = vmatprep.subr.bf16.mxu0 %v2077_v59  ;;  %v2099_v59 = vpack.c.bf16 %v611_v57, %v609_v50  ;;  %v2157_v50 = vpack.c.bf16 %v1342_v42, %v1340_v41  ;;  %v1344_v57 = vld [vmem:[#allocation9 + $0x128] sm:$0xff]  ;;  %v1369_v41 = vld [vmem:[#allocation9 + $0x1f0] sm:$0xff] }
 0x194   :  { %2140 = vmatpush1.bf16.msra.mxu1 %v2139_v61 }
 0x195   :  { %2142 = vmatprep.subr.bf16.mxu1 %v2141_v0  ;;  %v1343_v0 = vld [vmem:[#allocation9 + $0x120] sm:$0xff] }
 0x196   :  { %2080 = vmatpush1.bf16.msra.mxu0 %v2079_v2  ;;  %v2101_v2 = vpack.c.bf16 %v616_v60, %v614_v40  ;;  %v636_v40 = vld [vmem:[#allocation6 + $0xff8] sm:$0xff]  ;;  %v2159_v60 = vpack.c.bf16 %v1341_v52, %v1339_v51 }
 0x197   :  { %2082 = vmatprep.subr.bf16.mxu0 %v2081_v3  ;;  %v615_v3 = vld [vmem:[#allocation6 + $0xf50] sm:$0xff] }
 0x19a   :  { %2084 = vmatpush1.bf16.msra.mxu0 %v2083_v8  ;;  %v2143_v8 = vpack.c.bf16 %v1325_v1, %v1323_v27  ;;  %v1345_v27 = vld [vmem:[#allocation9 + $0x130] sm:$0xff]  ;;  %v2121_v1 = vpack.c.bf16 %v636_v40, %v634_v58 }
 0x19b   :  { %2086 = vmatprep.subr.bf16.mxu0 %v2085_v9  ;;  %v2103_v9 = vpack.c.bf16 %v615_v3, %v613_v63  ;;  %v2161_v63 = vpack.c.bf16 %v1346_v26, %v1344_v57  ;;  %v1348_v3 = vld [vmem:[#allocation9 + $0x148] sm:$0xff]  ;;  %v2163_v5 = vpack.c.bf16 %v1345_v27, %v1343_v0 }
 0x19c   :  { %2144 = vmatpush1.bf16.msra.mxu1 %v2143_v8  ;;  %v2165_v7 = vpack.c.bf16 %v1350_v4, %v1348_v3  ;;  %v1347_v8 = vld [vmem:[#allocation9 + $0x140] sm:$0xff]  ;;  %v1610_v3 = vld [vmem:[#allocation2] ss:$0 sm:$0xff] }
 0x19d   :  { %2146 = vmatprep.subr.bf16.mxu1 %v2145_v11  ;;  %v1354_v11 = vld [vmem:[#allocation9 + $0x178] sm:$0xff] }
 0x19e   :  { %2088 = vmatpush1.bf16.msra.mxu0 %v2087_v49  ;;  %v624_v49 = vld [vmem:[#allocation6 + $0xf98] sm:$0xff]  ;;  %v2169_v23 = vpack.c.bf16 %v1354_v11, %v1352_v10 }
 0x19f   :  { %2090 = vmatprep.subr.bf16.mxu0 %v2089_v21  ;;  %v1331_v21 = vld [vmem:[#allocation9 + $0xc0] sm:$0xff]  ;;  %v2109_v24 = vpack.c.bf16 %v624_v49, %v622_v17  ;;  %v2173_v49 = vpack.c.bf16 %v1358_v54, %v1356_v16 }
 0x1a0   :  { %2148 = vmatpush1.bf16.msra.mxu1 %v2147_v56  ;;  %v2151_v32 = vpack.c.bf16 %v1333_v22, %v1331_v21  ;;  %v1355_v56 = vld [vmem:[#allocation9 + $0x180] sm:$0xff] }
 0x1a1   :  { %2150 = vmatprep.subr.bf16.mxu1 %v2149_v20  ;;  %v1362_v20 = vld [vmem:[#allocation9 + $0x1b8] sm:$0xff] }
 0x1a2   :  { %2092 = vmatpush1.bf16.msra.mxu0 %v2091_v35  ;;  %v625_v35 = vld [vmem:[#allocation6 + $0xfa0] sm:$0xff]  ;;  %v2177_v22 = vpack.c.bf16 %v1362_v20, %v1360_v19 }
 0x1a3   :  { %2094 = vmatprep.subr.bf16.mxu0 %v2093_v55  ;;  %v627_v55 = vld [vmem:[#allocation6 + $0xfb0] sm:$0xff] }
 0x1a4   :  { %2152 = vmatpush1.bf16.msra.mxu1 %v2151_v32  ;;  %v2115_v47 = vpack.c.bf16 %v627_v55, %v625_v35  ;;  %v1365_v32 = vld [vmem:[#allocation9 + $0x1d0] sm:$0xff]  ;;  %v1367_v55 = vld [vmem:[#allocation9 + $0x1e0] sm:$0xff] }
 0x1a5   :  { %2154 = vmatprep.subr.bf16.mxu1 %v2153_v36  ;;  %v2187_v42 = vpack.c.bf16 %v1369_v41, %v1367_v55 }
 0x1a6   :  { %2096 = vmatpush1.bf16.msra.mxu0 %v2095_v48  ;;  %v629_v48 = vld [vmem:[#allocation6 + $0xfc0] sm:$0xff] }
 0x1a7   :  { %2098 = vmatprep.subr.bf16.mxu0 %v2097_v46  ;;  %v631_v46 = vld [vmem:[#allocation6 + $0xfd0] sm:$0xff] }
 0x1a8   :  { %2156 = vmatpush1.bf16.msra.mxu1 %v2155_v45  ;;  %v2119_v61 = vpack.c.bf16 %v631_v46, %v629_v48  ;;  %v645_v45 = vsub.s32 1, %v2634_v62 }
 0x1a9   :  { %2158 = vmatprep.subr.bf16.mxu1 %v2157_v50  ;;  %v1466_v50 = vld [vmem:[#allocation12] sm:$0x3] }
 0x1aa   :  { %2100 = vmatpush1.bf16.msra.mxu0 %v2099_v59  ;;  %v633_v59 = vld [vmem:[#allocation6 + $0xfe0] sm:$0xff]  ;;  %v646_v48 = vrot.slane %v637_v44, %v645_v45  ;;  %v1471_v26 = vrot.slane %v1466_v50, %v641_v43  ;;  %v1475_v40 = vrot.slane %v1466_v50, %v645_v45 }
 0x1ab   :  { %2102 = vmatprep.subr.bf16.mxu0 %v2101_v2  ;;  %v635_v2 = vld [vmem:[#allocation6 + $0xff0] sm:$0xff] }
 0x1ac   :  { %2160 = vmatpush1.bf16.msra.mxu1 %v2159_v60  ;;  %v2123_v6 = vpack.c.bf16 %v635_v2, %v633_v59  ;;  %v2487_v2 = vmov 0  }
 0x1ad   :  { %2162 = vmatprep.subr.bf16.mxu1 %v2161_v63  ;;  %2220 = vset.pattern.permute.xlu0 %v2487_v2 }
 0x1ae   :  { %2104 = vmatpush1.bf16.msra.mxu0 %v2103_v9  ;;  %v1349_v9 = vld [vmem:[#allocation9 + $0x150] sm:$0xff] }
 0x1af   :  { %2106 = vmatprep.subr.bf16.mxu0 %v2105_v14  ;;  %v2167_v13 = vpack.c.bf16 %v1349_v9, %v1347_v8  ;;  %v1351_v14 = vld [vmem:[#allocation9 + $0x160] sm:$0xff] }
 0x1b0   :  { %2164 = vmatpush1.bf16.msra.mxu1 %v2163_v5  ;;  %v2171_v17 = vpack.c.bf16 %v1353_v15, %v1351_v14 }
 0x1b1   :  { %2166 = vmatprep.subr.bf16.mxu1 %v2165_v7 }
 0x1b2   :  { %2108 = vmatpush1.bf16.msra.mxu0 %v2107_v18  ;;  %v1357_v18 = vld [vmem:[#allocation9 + $0x190] sm:$0xff] }
 0x1b3   :  { %2110 = vmatprep.subr.bf16.mxu0 %v2109_v24  ;;  %v2175_v21 = vpack.c.bf16 %v1357_v18, %v1355_v56  ;;  %v1359_v24 = vld [vmem:[#allocation9 + $0x1a0] sm:$0xff] }
 0x1b4   :  { %2168 = vmatpush1.bf16.msra.mxu1 %v2167_v13  ;;  %v2179_v30 = vpack.c.bf16 %v1361_v25, %v1359_v24  ;;  %v1506_v24 = vld [vmem:[#allocation14] sm:$0xf] }
 0x1b5   :  { %2170 = vmatprep.subr.bf16.mxu1 %v2169_v23 }
 0x1b6   :  { %2112 = vmatpush1.bf16.msra.mxu0 %v2111_v34  ;;  %v2183_v34 = vpack.c.bf16 %v1365_v32, %v1363_v31 }
 0x1b7   :  { %2114 = vmatprep.subr.bf16.mxu0 %v2113_v39  ;;  %v2185_v39 = vpack.c.bf16 %v1370_v38, %v1368_v37 }
 0x1b8   :  { %2172 = vmatpush1.bf16.msra.mxu1 %v2171_v17 }
 0x1b9   :  { %2174 = vmatprep.subr.bf16.mxu1 %v2173_v49 }
 0x1ba   :  { %2116 = vmatpush1.bf16.msra.mxu0 %v2115_v47  ;;  %v642_v47 = vrot.slane %v637_v44, %v641_v43 }
 0x1bb   :  { %2118 = vmatprep.subr.bf16.mxu0 %v2117_v53 }
 0x1bc   :  { %2176 = vmatpush1.bf16.msra.mxu1 %v2175_v21 }
 0x1bd   :  { %2178 = vmatprep.subr.bf16.mxu1 %v2177_v22 }
 0x1be   :  { %2120 = vmatpush1.bf16.msra.mxu0 %v2119_v61 }
 0x1bf   :  { %2122 = vmatprep.subr.bf16.mxu0 %v2121_v1 }
 0x1c0   :  { %2180 = vmatpush1.bf16.msra.mxu1 %v2179_v30 }
 0x1c2   :  { %2124 = vmatpush1.bf16.msra.mxu0 %v2123_v6  ;;  %v1371_v6 = vld [vmem:[#allocation11] sm:$0x3] }
 0x1c3   :  { %v1376_v7 = vrot.slane %v1371_v6, %v641_v43  ;;  %v1380_v8 = vrot.slane %v1371_v6, %v645_v45 }
 0x1c5   :  { %1299 = vmatmul.mubr.f32.vlgmr.msra.gmra.mrb[0].mxu0 %v2701_v33  ;;  %v2181_v33 = vpack.c.bf16 %v1366_v29, %v1364_v28  ;;  %v1507_v28 = vsub.f32 1.0, %v1506_v24 }
 0x1c7   :  { %2182 = vmatprep.subr.bf16.mxu1 %v2181_v33  ;;  %v1508_v30 = vmax.f32 %v1507_v28, 1e-10 }
 0x1c8   :  { %2184 = vmatpush1.bf16.msra.mxu1 %v2183_v34 }
 0x1c9   :  { %2186 = vmatprep.subr.bf16.mxu1 %v2185_v39 }
 0x1cc   :  { %2188 = vmatpush1.bf16.msra.mxu1 %v2187_v42 }
 0x217   :  { %v945_v35 = vpop.f32.mrb[0].mxu1 }
 0x218   :  { %v947_v36 = vpop.f32.mrb[1].mxu1  ;;  %v2189_v51 = vadd.f32 %v945_v35, %v642_v47  ;;  %v2488_v35 = vmov 269488144  }
 0x219   :  { %v2191_v52 = vadd.f32 %v947_v36, %v646_v48  ;;  %v1516_v36 = vunpack.c.l.s4 %v2488_v35 }
 0x21b   :  { %v1517_v38 = vunpack.c.0.s8 %v1516_v36 }
 0x21d   :  { %v1520_v42 = vsub.s32 %v1517_v38, %v2634_v62 }
 0x298   :  { %v1300_v53 = vpop.f32.mrb[0].mxu0 }
 0x299   :  { %v2190_v46 = vadd.f32 %v2189_v51, %v1300_v53  ;;  %v1302_v57 = vpop.f32.mrb[1].mxu0 }
 0x29a   :  { %v2192_v58 = vadd.f32 %v2191_v52, %v1302_v57 }
 0x29b   :  { %v1305_v60 = vmax.f32 %v2190_v46, 0.0 }
 0x29c   :  { %v1306_v61 = vmax.f32 %v2192_v58, 0.0 }
 0x29d   :  { %v1478_v59 = vmul.f32 %v1471_v26, %v1305_v60 }
 0x29e   :  { %1447 = vmatprep.mubr.f32.mxu1 %v1306_v61  ;;  %v1479_v63 = vmul.f32 %v1475_v40, %v1306_v61 }
 0x29f   :  { %1448 = vmatmul.mubr.f32.vlgmr.msra.gmra.mrb[2].mxu1 %v1305_v60  ;;  %v1481_v0 = vsel %vm1480_vm0, %v1478_v59, 0.0 }
 0x2a0   :  { %v1482_v27 = vsel %vm1480_vm0, %v1479_v63, 0.0 }
 0x2a1   :  { %v1483_v1 = vadd.f32 %v1482_v27, %v1481_v0 }
 0x2a3   :  { %1484 = vadd.xlane.f32.xlu0 %v1483_v1 }
 0x330   :  { %v1485_v4 = vpop.xlane.xlu0 %1484 }
 0x331   :  { %v1493_v5 = vadd.f32 %v1610_v3, %v1485_v4 }
 0x333   :  { %1496 = vperm.xlu0 %2220, %v1493_v5  }
 0x372   :  { %v1449_v9 = vpop.f32.mrb[2].mxu1 }
 0x373   :  { %v1450_v10 = vadd.f32 %v1449_v9, %v1376_v7  ;;  %v1451_v11 = vpop.f32.mrb[3].mxu1 }
 0x374   :  { %v1452_v13 = vadd.f32 %v1451_v11, %v1380_v8 }
 0x375   :  { %v1454_v23 = vmul.f32 1.442695, %v1450_v10 }
 0x376   :  { %v1456_v14 = vmul.f32 1.442695, %v1452_v13 }
 0x377   :  { %2225 = vpow2.f32 %v1454_v23 }
 0x378   :  { %2227 = vpow2.f32 %v1456_v14 }
 0x381   :  { %v2226_v15 = vpop.eup %2225 }
 0x382   :  { %v2228_v16 = vpop.eup %2227  ;;  %v1458_v54 = vadd.f32 1.0, %v2226_v15 }
 0x383   :  { %v1459_v17 = vadd.f32 1.0, %v2228_v16 }
 0x384   :  { %2229 = vlog2.f32 %v1458_v54 }
 0x385   :  { %2231 = vlog2.f32 %v1459_v17 }
 0x38e   :  { %v2230_v49 = vpop.eup %2229 }
 0x38f   :  { %v2232_v56 = vpop.eup %2231  ;;  %v2709_v18 = vmul.f32 0.6931472, %v2230_v49 }
 0x390   :  { %v2711_v19 = vmul.f32 0.6931472, %v2232_v56 }
 0x391   :  { %v1464_v20 = vmax.f32 %v2709_v18, 1e-10 }
 0x392   :  { %v1465_v21 = vmax.f32 %v2711_v19, 1e-10 }
 0x394   :  { %v1555_v22 = vcombine.low %v1464_v20, %v1465_v21 }
 0x396   :  { %1612 = vst.sshfl [vmem:[#allocation18] sm:$0x33 pattern:$0x76325410] %v1555_v22 }
 0x3b2   :  { %v1497_v25 = vpop.permute.xlu0 %1496 }
 0x3b3   :  { %v1499_v29 = vmul.f32 1.442695, %v1497_v25 }
 0x3b5   :  { %2233 = vpow2.f32 %v1499_v29 }
 0x3b6   :  { %2235 = vlog2.f32 %v1508_v30 }
 0x3bf   :  { %v2234_v33 = vpop.eup %2233 }
 0x3c0   :  { %v1501_v31 = vadd.f32 1.0, %v2234_v33  ;;  %v2236_v32 = vpop.eup %2235 }
 0x3c1   :  { %v1510_v34 = vmul.f32 0.6931472, %v2236_v32 }
 0x3c2   :  { %2237 = vlog2.f32 %v1501_v31 }
 0x3c3   :  { %v1511_v37 = vsub.f32 0.0, %v1510_v34 }
 0x3c5   :  { %2239 = vlog2.f32 %v1511_v37 }
 0x3cc   :  { %v2238_v39 = vpop.eup %2237 }
 0x3cd   :  { %v1503_v55 = vmul.f32 0.6931472, %v2238_v39 }
 0x3cf   :  { %v1504_v41 = vmax.f32 %v1503_v55, 1e-10 }
 0x3d1   :  { %v1505_v43 = vmin.f32 %v1504_v41, 10.0 }
 0x3d3   :  { %v1521_v44 = vrot.slane %v1505_v43, %v1520_v42 }
 0x3d5   :  { %2241 = vrcp.f32 %v1521_v44  ;;  %1552 = vst [vmem:[#allocation16] sm:$0xf] %v1521_v44 }
 0x3d6   :  { %2410 = shalt.err (!%p2407_p4)
}
 0x3d7   :  { %s2411_s12 = scalar_lea.hbm %s2770_s9, 64 }
 0x3d8   :  { %p2412_p5 = scmp.ne.s32.totalorder %s2770_s9, %s2411_s12  ;;  %p2415_p6 = scmp.lt.u32.totalorder %s2411_s12, %s2770_s9 }
 0x3da   :  { %p2417_p7 = pnand %p2415_p6, %p2412_p5 }
 0x3dc   :  { %2420 = shalt.err (!%p2417_p7)
}
 0x3dd   :  { %1584 = dma.vmem_to_hbm [thread:$0]  %s1582_s30, 64, %s2770_s9, [#allocation17]  }
 0x3de   :  { %s2421_s16 = scalar_lea.vmem %s1592_s3, 64  ;;  %p2426_p9 = scmp.lt.s32.totalorder %s1592_s3, %s1592_s3 }
 0x3df   :  { %p2422_p8 = scmp.ne.s32.totalorder %s1592_s3, %s2421_s16  ;;  %p2427_p10 = scmp.lt.s32.totalorder %s2421_s16, %s2421_s16 }
 0x3e1   :  { %p2428_p11 = por %p2427_p10, %p2426_p9 }
 0x3e3   :  { %p2429_p12 = pnand %p2428_p11, %p2422_p8 }
 0x3e5   :  { %2432 = shalt.err (!%p2429_p12)
}
 0x3e6   :  { %s2433_s5 = scalar_lea.hbm %s2771_s10, 64 }
 0x3e7   :  { %p2434_p13 = scmp.ne.s32.totalorder %s2771_s10, %s2433_s5  ;;  %p2437_p0 = scmp.lt.u32.totalorder %s2433_s5, %s2771_s10 }
 0x3e9   :  { %p2439_p1 = pnand %p2437_p0, %p2434_p13 }
 0x3eb   :  { %2442 = shalt.err (!%p2439_p1)
}
 0x3ec   :  { %1594 = dma.vmem_to_hbm [thread:$0]  %s1592_s3, 64, %s2771_s10, [#allocation17]   ;;  %v2240_v62 = vpop.eup %2239 }
 0x3ed   :  { %v1513_v45 = vmul.f32 0.6931472, %v2240_v62  ;;  %v2242_v47 = vpop.eup %2241  ;;  %s2491_s23 = smov [#allocation15]  }
 0x3ee   :  { %s1571_s26 = sshll.u32 %s2491_s23, 4  ;;  %s1572_s26 = int_to_ptr.vmem [resolvable:$true] %s1571_s26 }
 0x3ef   :  { %v1524_v48 = vmul.f32 %v2242_v47, %v1513_v45  ;;  %s2443_s10 = scalar_lea.vmem %s1572_s26, 64  ;;  %p2448_p3 = scmp.lt.s32.totalorder %s1572_s26, %s1572_s26 }
 0x3f0   :  { %p2444_p2 = scmp.ne.s32.totalorder %s1572_s26, %s2443_s10  ;;  %p2449_p4 = scmp.lt.s32.totalorder %s2443_s10, %s2443_s10 }
 0x3f1   :  { %v1525_v50 = vmul.f32 1.442695, %v1524_v48 }
 0x3f2   :  { %p2450_p5 = por %p2449_p4, %p2448_p3 }
 0x3f3   :  { %2243 = vpow2.f32 %v1525_v50 }
 0x3f4   :  { %p2451_p6 = pnand %p2450_p5, %p2444_p2 }
 0x3fd   :  { %v2244_v51 = vpop.eup %2243 }
 0x3fe   :  { %v1534_v52 = vrot.slane %v2244_v51, %v2637_v12 }
 0x400   :  { %v1535_v53 = vcombine.high %v1534_v52, %v1534_v52  ;;  %v1538_v46 = vmul.f32 %v1534_v52, %v1464_v20 }
 0x402   :  { %v1539_v57 = vmul.f32 %v1535_v53, %v1465_v21 }
 0x404   :  { %v1542_v26 = vcombine.low %v1538_v46, %v1539_v57 }
 0x406   :  { %1611 = vst.sshfl [vmem:[#allocation15] sm:$0x33 pattern:$0x76325410] %v1542_v26 }
 0x407   :  { %2454 = shalt.err (!%p2451_p6)
}
 0x408   :  { %s2455_s28 = scalar_lea.hbm %s2769_s8, 64 }
 0x409   :  { %p2456_p7 = scmp.ne.s32.totalorder %s2769_s8, %s2455_s28  ;;  %p2459_p8 = scmp.lt.u32.totalorder %s2455_s28, %s2769_s8 }
 0x40b   :  { %p2461_p9 = pnand %p2459_p8, %p2456_p7 }
 0x40d   :  { %2464 = shalt.err (!%p2461_p9)
}
 0x40e   :  { %1574 = dma.vmem_to_hbm [thread:$0]  %s1572_s26, 64, %s2769_s8, [#allocation5]  }
 0x40f   :  { %2473 = dma.done.wait [#allocation5], 64  }
 0x410   :  { %2474 = vsyncadd [#allocation5], 4294967232 }
 0x411   :  { %2475 = dma.done.wait [#allocation17], 128  }
 0x412   :  { %2476 = vsyncadd [#allocation17], 4294967168 }
 0x413   :  { %1604 = vsyncpa [#allocation4], 1 }
 0x414   :  { %1605 = vsyncpa [#allocation7], 1 }
 0x415   :  { %1606 = vsyncpa [#allocation10], 1 }
 0x416   :  { %1607 = vsyncpa [#allocation13], 1 }
 0x417   :  { %1608 = vsyncpa [#allocation5], 1 }
 0x418   :  { %1609 = vsyncpa [#allocation17], 1 }

</bundles_post_ra>
